<compile_context>
chip_gen: v7x
topology: tpu7x:2x2x1
jax: 0.10.0
libtpu: 0.0.40
codegen_flags: <defaults>
</compile_context>

<pallas_src>
import functools

import jax
import jax.numpy as jnp
from jax import lax
from jax.experimental import pallas as pl
from jax.experimental.pallas import tpu as pltpu


# ------------------------------- helpers -------------------------------------

def _vmem():
    return pl.BlockSpec(memory_space=pltpu.MemorySpace.VMEM)


def _smem():
    return pl.BlockSpec(memory_space=pltpu.MemorySpace.SMEM)


def _rup(x, m):
    return ((x + m - 1) // m) * m


def _pad_to(a, shape):
    pads = [(0, s - d) for d, s in zip(a.shape, shape)]
    return jnp.pad(a, pads)


def _onehot(idx, shape, axis, dtype):
    """(shape) mask where iota along `axis` == idx (idx broadcasts)."""
    io = lax.broadcasted_iota(jnp.int32, shape, axis)
    return (io == idx).astype(jnp.float32).astype(dtype)


# ----------------------------- fused Pallas kernel ---------------------------

def gnn_vn_fused_kernel(ope_ref,
                        x0_ref, x1_ref, e0_ref, e1_ref,
                        src_ref, dst_ref, batch_col_ref, batch_row_ref,
                        atom_t_ref, bond_t_ref, vn0_ref,
                        w1_ref, b1_ref, s1_ref, t1_ref,
                        w2_ref, b2_ref, so_ref, to_ref,
                        vw1_ref, vb1_ref, vs1_ref, vt1_ref,
                        vw2_ref, vb2_ref, vs2_ref, vt2_ref,
                        out_ref):
    f32, bf16 = jnp.float32, jnp.bfloat16
    L = w1_ref.shape[0]            # num GIN layers
    N = x0_ref.shape[0]            # nodes
    E = e0_ref.shape[0]            # edges
    B = vn0_ref.shape[0]           # (padded) number of graphs
    Va = atom_t_ref.shape[0]       # padded total atom vocab
    Vb = bond_t_ref.shape[1]       # padded total bond vocab

    # ---- AtomEncoder in-kernel: (multi-hot over concatenated vocab) @ table ----
    oh_atom = (_onehot(x0_ref[...], (N, Va), 1, f32)
               + _onehot(x1_ref[...], (N, Va), 1, f32))
    h = jnp.dot(oh_atom, atom_t_ref[...], preferred_element_type=f32)

    vn = vn0_ref[...]

    # ---- graph-structure one-hot masks (built once, reused every layer) ----
    gather_src = _onehot(src_ref[...], (E, N), 1, bf16)       # [e,n] = (src[e]==n)
    scatter_dst = _onehot(dst_ref[...], (N, E), 0, bf16)      # [n,e] = (dst[e]==n)
    vn_bcast = _onehot(batch_col_ref[...], (N, B), 1, f32)    # [n,b] = (batch[n]==b)
    pool_mat = _onehot(batch_row_ref[...], (B, N), 0, f32)    # [b,n] = (batch[n]==b)

    # ---- BondEncoder multi-hot (edge_attr is layer-independent; tables per layer) ----
    oh_bond = (_onehot(e0_ref[...], (E, Vb), 1, f32)
               + _onehot(e1_ref[...], (E, Vb), 1, f32))

    def mlp_bn(x, w1, b1, s1, t1, w2, b2, s2, t2, final_relu):
        # Linear -> folded BN -> ReLU -> Linear -> folded BN [-> ReLU]
        z = jnp.dot(x, w1, preferred_element_type=f32) + b1
        z = z * s1 + t1
        z = jnp.maximum(z, 0.0)
        z = jnp.dot(z, w2, preferred_element_type=f32) + b2
        z = z * s2 + t2
        if final_relu:
            z = jnp.maximum(z, 0.0)
        return z

    for layer in range(L):   # unrolled: L is small & static
        # add the virtual-node message to every node of its graph
        h_in = h + jnp.dot(vn_bcast, vn, preferred_element_type=f32)

        # BondEncoder for this layer (single matmul over concatenated vocab)
        e_emb = jnp.dot(oh_bond, bond_t_ref[layer], preferred_element_type=f32)

        # GIN message + 'add' aggregation (bf16 MXU operands, f32 accumulation)
        x_src = jnp.dot(gather_src, h_in.astype(bf16), preferred_element_type=f32)
        msg = jnp.maximum(x_src + e_emb, 0.0).astype(bf16)
        agg = jnp.dot(scatter_dst, msg, preferred_element_type=f32)

        # GIN MLP + outer BatchNorm (+ relu except last layer); dropout = identity
        h = mlp_bn(ope_ref[layer] * h_in + agg,
                   w1_ref[layer], b1_ref[layer], s1_ref[layer], t1_ref[layer],
                   w2_ref[layer], b2_ref[layer], so_ref[layer], to_ref[layer],
                   final_relu=(layer != L - 1))

        # virtual-node update (skipped on the last layer)
        if layer < L - 1:
            pooled = jnp.dot(pool_mat, h_in, preferred_element_type=f32)
            vn = mlp_bn(pooled + vn,
                        vw1_ref[layer], vb1_ref[layer], vs1_ref[layer], vt1_ref[layer],
                        vw2_ref[layer], vb2_ref[layer], vs2_ref[layer], vt2_ref[layer],
                        final_relu=True)

    out_ref[...] = h


# --------------------------- parameter construction --------------------------

def _bn_fold(gamma, beta, running_mean, running_var, eps=1e-5):
    scale = gamma / jnp.sqrt(running_var + eps)
    shift = beta - running_mean * scale
    return scale.reshape(1, -1).astype(jnp.float32), shift.reshape(1, -1).astype(jnp.float32)


def _bn_params(key, dim):
    k1, k2, k3, k4 = jax.random.split(key, 4)
    gamma = 1.0 + 0.1 * jax.random.normal(k1, (dim,), jnp.float32)
    beta = 0.1 * jax.random.normal(k2, (dim,), jnp.float32)
    rm = 0.1 * jax.random.normal(k3, (dim,), jnp.float32)
    rv = 1.0 + 0.1 * jnp.abs(jax.random.normal(k4, (dim,), jnp.float32))
    return _bn_fold(gamma, beta, rm, rv)


def init_params(key, num_layer, emb_dim, atom_vocab, bond_vocab):
    params = {}
    keys = jax.random.split(key, 8 + 8 * num_layer)
    ki = iter(keys)
    d, d2 = emb_dim, 2 * emb_dim

    params['atom_emb'] = [0.1 * jax.random.normal(next(ki), (v, d), jnp.float32)
                          for v in atom_vocab]
    params['vn_emb'] = jnp.zeros((1, d), jnp.float32)   # constant-init 0, as in the module

    params['layers'] = []
    params['bond_emb'] = []
    params['vn_mlp'] = []
    for layer in range(num_layer):
        kl = jax.random.split(next(ki), 8)
        lp = {
            'eps': jnp.zeros((1,), jnp.float32),  # GIN eps init 0
            'w1': 0.1 * jax.random.normal(kl[0], (d, d2), jnp.float32),
            'b1': 0.01 * jax.random.normal(kl[1], (1, d2), jnp.float32),
            'w2': 0.1 * jax.random.normal(kl[2], (d2, d), jnp.float32),
            'b2': 0.01 * jax.random.normal(kl[3], (1, d), jnp.float32),
        }
        lp['s1'], lp['t1'] = _bn_params(kl[4], d2)          # BN inside GIN MLP
        lp['s_out'], lp['t_out'] = _bn_params(kl[5], d)     # outer batch_norms[layer]
        params['layers'].append(lp)

        params['bond_emb'].append(
            [0.1 * jax.random.normal(k, (v, d), jnp.float32)
             for k, v in zip(jax.random.split(kl[6], len(bond_vocab)), bond_vocab)])

        if layer < num_layer - 1:
            kv = jax.random.split(next(ki), 6)
            vp = {
                'w1': 0.1 * jax.random.normal(kv[0], (d, d2), jnp.float32),
                'b1': 0.01 * jax.random.normal(kv[1], (1, d2), jnp.float32),
                'w2': 0.1 * jax.random.normal(kv[2], (d2, d), jnp.float32),
                'b2': 0.01 * jax.random.normal(kv[3], (1, d), jnp.float32),
            }
            vp['s1'], vp['t1'] = _bn_params(kv[4], d2)
            vp['s2'], vp['t2'] = _bn_params(kv[5], d)
            params['vn_mlp'].append(vp)
    return params


# --------------------------------- forward -----------------------------------

@functools.partial(jax.jit, static_argnames=("num_graphs", "num_layer", "emb_dim"))
def gnn_node_virtualnode_forward(params, x_atoms, edge_index, edge_attr, batch,
                                 num_graphs, num_layer, emb_dim):
    n_nodes = x_atoms.shape[0]
    n_edges = edge_attr.shape[0]
    d = emb_dim
    dp = _rup(max(d, 128), 128)          # lane-dense feature width
    hp = _rup(max(2 * d, 128), 128)      # lane-dense hidden width
    bp = _rup(max(num_graphs, 8), 8)     # sublane-friendly #graphs (extra rows inert)

    # --- pack / pad parameters; zeros in padded channels keep them exactly 0 ---
    atom_v0 = params['atom_emb'][0].shape[0]
    bond_v0 = params['bond_emb'][0][0].shape[0]

    def concat_pad_tables(tables):  # list of (V_i, d) -> (rup(sum V_i, 8), dp)
        t = jnp.concatenate(tables, axis=0)
        return _pad_to(t, (_rup(t.shape[0], 8), dp))

    atom_t = concat_pad_tables(params['atom_emb'])
    bond_t = jnp.stack([concat_pad_tables(params['bond_emb'][l])
                        for l in range(num_layer)])

    def stack(key, shape, src):
        return jnp.stack([_pad_to(p[key], shape) for p in src])

    Lp = params['layers']
    w1 = stack('w1', (dp, hp), Lp); b1 = stack('b1', (1, hp), Lp)
    s1 = stack('s1', (1, hp), Lp); t1 = stack('t1', (1, hp), Lp)
    w2 = stack('w2', (hp, dp), Lp); b2 = stack('b2', (1, dp), Lp)
    so = stack('s_out', (1, dp), Lp); to = stack('t_out', (1, dp), Lp)

    Vp = params['vn_mlp']
    vw1 = stack('w1', (dp, hp), Vp); vb1 = stack('b1', (1, hp), Vp)
    vs1 = stack('s1', (1, hp), Vp); vt1 = stack('t1', (1, hp), Vp)
    vw2 = stack('w2', (hp, dp), Vp); vb2 = stack('b2', (1, dp), Vp)
    vs2 = stack('s2', (1, dp), Vp); vt2 = stack('t2', (1, dp), Vp)

    ope = jnp.concatenate([1.0 + p['eps'] for p in Lp]).astype(jnp.float32)  # (num_layer,)

    vn0 = jnp.zeros((bp, dp), jnp.float32) + _pad_to(params['vn_emb'], (1, dp))

    # --- index / categorical-feature inputs for in-kernel gather/scatter ---
    # feature-1 indices are offset so the concatenated vocab table can be used.
    x_f0 = x_atoms[:, 0:1].astype(jnp.int32)
    x_f1 = (x_atoms[:, 1:2] + atom_v0).astype(jnp.int32)
    ea_f0 = edge_attr[:, 0:1].astype(jnp.int32)
    ea_f1 = (edge_attr[:, 1:2] + bond_v0).astype(jnp.int32)
    src_col = edge_index[0].reshape(n_edges, 1).astype(jnp.int32)
    dst_row = edge_index[1].reshape(1, n_edges).astype(jnp.int32)
    batch_col = batch.reshape(n_nodes, 1).astype(jnp.int32)
    batch_row = batch.reshape(1, n_nodes).astype(jnp.int32)

    out_p = pl.pallas_call(
        gnn_vn_fused_kernel,
        out_shape=jax.ShapeDtypeStruct((n_nodes, dp), jnp.float32),
        in_specs=[_smem()] + [_vmem()] * 27,
        out_specs=_vmem(),
    )(ope,
      x_f0, x_f1, ea_f0, ea_f1,
      src_col, dst_row, batch_col, batch_row,
      atom_t, bond_t, vn0,
      w1, b1, s1, t1, w2, b2, so, to,
      vw1, vb1, vs1, vt1, vw2, vb2, vs2, vt2)

    return out_p[:, :d]   # drop lane padding


# ----------------------------------- main -------------------------------------

if __name__ == "__main__":
    num_layer = 3
    emb_dim = 32
    N, E, B = 16, 32, 2
    atom_vocab = [10, 6]
    bond_vocab = [5, 3]

    key = jax.random.PRNGKey(0)
    kx, ke, ks, kd, kp = jax.random.split(key, 5)

    # node / edge categorical features
    x_atoms = jnp.stack(
        [jax.random.randint(k, (N,), 0, v)
         for k, v in zip(jax.random.split(kx, len(atom_vocab)), atom_vocab)], axis=1)
    edge_attr = jnp.stack(
        [jax.random.randint(k, (E,), 0, v)
         for k, v in zip(jax.random.split(ke, len(bond_vocab)), bond_vocab)], axis=1)

    # graph assignment: two graphs of 8 nodes each; edges stay within their graph
    batch = jnp.repeat(jnp.arange(B, dtype=jnp.int32), N // B)
    npg, epg = N // B, E // B
    src = jnp.concatenate([jax.random.randint(k, (epg,), g * npg, (g + 1) * npg)
                           for g, k in enumerate(jax.random.split(ks, B))])
    dst = jnp.concatenate([jax.random.randint(k, (epg,), g * npg, (g + 1) * npg)
                           for g, k in enumerate(jax.random.split(kd, B))])
    edge_index = jnp.stack([src, dst], axis=0).astype(jnp.int32)

    params = init_params(kp, num_layer, emb_dim, atom_vocab, bond_vocab)

    out = gnn_node_virtualnode_forward(params, x_atoms, edge_index, edge_attr, batch,
                                       num_graphs=B, num_layer=num_layer, emb_dim=emb_dim)
    out = jax.block_until_ready(out)
    assert out.shape == (N, emb_dim) and out.dtype == jnp.float32
    assert bool(jnp.all(jnp.isfinite(out)))
    print("KERNEL_OK")
</pallas_src>

<mosaic_0001>
module attributes {stable_mosaic.version = 11 : i64} {
  func.func @gnn_vn_fused_kernel(%arg0: memref<3xf32, #tpu.memory_space<smem>>, %arg1: memref<16x1xi32, #tpu.memory_space<vmem>>, %arg2: memref<16x1xi32, #tpu.memory_space<vmem>>, %arg3: memref<32x1xi32, #tpu.memory_space<vmem>>, %arg4: memref<32x1xi32, #tpu.memory_space<vmem>>, %arg5: memref<32x1xi32, #tpu.memory_space<vmem>>, %arg6: memref<1x32xi32, #tpu.memory_space<vmem>>, %arg7: memref<16x1xi32, #tpu.memory_space<vmem>>, %arg8: memref<1x16xi32, #tpu.memory_space<vmem>>, %arg9: memref<16x128xf32, #tpu.memory_space<vmem>>, %arg10: memref<3x8x128xf32, #tpu.memory_space<vmem>>, %arg11: memref<8x128xf32, #tpu.memory_space<vmem>>, %arg12: memref<3x128x128xf32, #tpu.memory_space<vmem>>, %arg13: memref<3x1x128xf32, #tpu.memory_space<vmem>>, %arg14: memref<3x1x128xf32, #tpu.memory_space<vmem>>, %arg15: memref<3x1x128xf32, #tpu.memory_space<vmem>>, %arg16: memref<3x128x128xf32, #tpu.memory_space<vmem>>, %arg17: memref<3x1x128xf32, #tpu.memory_space<vmem>>, %arg18: memref<3x1x128xf32, #tpu.memory_space<vmem>>, %arg19: memref<3x1x128xf32, #tpu.memory_space<vmem>>, %arg20: memref<2x128x128xf32, #tpu.memory_space<vmem>>, %arg21: memref<2x1x128xf32, #tpu.memory_space<vmem>>, %arg22: memref<2x1x128xf32, #tpu.memory_space<vmem>>, %arg23: memref<2x1x128xf32, #tpu.memory_space<vmem>>, %arg24: memref<2x128x128xf32, #tpu.memory_space<vmem>>, %arg25: memref<2x1x128xf32, #tpu.memory_space<vmem>>, %arg26: memref<2x1x128xf32, #tpu.memory_space<vmem>>, %arg27: memref<2x1x128xf32, #tpu.memory_space<vmem>>, %arg28: memref<16x128xf32, #tpu.memory_space<vmem>>) attributes {dimension_semantics = [], scalar_prefetch = 0 : i64, scratch_operands = 0 : i64, tpu.core_type = #tpu.core_type<tc>} {
    %c0 = arith.constant 0 : index
    %c0_0 = arith.constant 0 : index
    %0 = vector.load %arg1[%c0, %c0_0] : memref<16x1xi32, #tpu.memory_space<vmem>>, vector<16x1xi32>
    %1 = tpu.iota {dimensions = array<i32: 1>} : vector<16x16xi32>
    %2 = vector.broadcast %0 : vector<16x1xi32> to vector<16x16xi32>
    %3 = arith.cmpi eq, %1, %2 : vector<16x16xi32>
    %4 = arith.extui %3 : vector<16x16xi1> to vector<16x16xi32>
    %5 = arith.sitofp %4 : vector<16x16xi32> to vector<16x16xf32>
    %c0_1 = arith.constant 0 : index
    %c0_2 = arith.constant 0 : index
    %6 = vector.load %arg2[%c0_1, %c0_2] : memref<16x1xi32, #tpu.memory_space<vmem>>, vector<16x1xi32>
    %7 = tpu.iota {dimensions = array<i32: 1>} : vector<16x16xi32>
    %8 = vector.broadcast %6 : vector<16x1xi32> to vector<16x16xi32>
    %9 = arith.cmpi eq, %7, %8 : vector<16x16xi32>
    %10 = arith.extui %9 : vector<16x16xi1> to vector<16x16xi32>
    %11 = arith.sitofp %10 : vector<16x16xi32> to vector<16x16xf32>
    %12 = arith.addf %5, %11 : vector<16x16xf32>
    %c0_3 = arith.constant 0 : index
    %c0_4 = arith.constant 0 : index
    %13 = vector.load %arg9[%c0_3, %c0_4] : memref<16x128xf32, #tpu.memory_space<vmem>>, vector<16x128xf32>
    %cst = arith.constant dense<0.000000e+00> : vector<16x128xf32>
    %14 = tpu.matmul %12, %13, %cst {dimension_numbers = #tpu.dot_dimension_numbers<[1], [0], [0], [1], [0, 0, 1, 1], [], []>} : vector<16x16xf32>, vector<16x128xf32>, vector<16x128xf32> -> vector<16x128xf32>
    %c0_5 = arith.constant 0 : index
    %c0_6 = arith.constant 0 : index
    %15 = vector.load %arg11[%c0_5, %c0_6] : memref<8x128xf32, #tpu.memory_space<vmem>>, vector<8x128xf32>
    %c0_7 = arith.constant 0 : index
    %c0_8 = arith.constant 0 : index
    %16 = vector.load %arg5[%c0_7, %c0_8] : memref<32x1xi32, #tpu.memory_space<vmem>>, vector<32x1xi32>
    %17 = tpu.iota {dimensions = array<i32: 1>} : vector<32x16xi32>
    %18 = vector.broadcast %16 : vector<32x1xi32> to vector<32x16xi32>
    %19 = arith.cmpi eq, %17, %18 : vector<32x16xi32>
    %20 = arith.extui %19 : vector<32x16xi1> to vector<32x16xi32>
    %21 = arith.sitofp %20 : vector<32x16xi32> to vector<32x16xf32>
    %22 = arith.truncf %21 : vector<32x16xf32> to vector<32x16xbf16>
    %c0_9 = arith.constant 0 : index
    %c0_10 = arith.constant 0 : index
    %23 = vector.load %arg6[%c0_9, %c0_10] : memref<1x32xi32, #tpu.memory_space<vmem>>, vector<1x32xi32>
    %24 = tpu.iota {dimensions = array<i32: 0>} : vector<16x32xi32>
    %25 = vector.broadcast %23 : vector<1x32xi32> to vector<16x32xi32>
    %26 = arith.cmpi eq, %24, %25 : vector<16x32xi32>
    %27 = arith.extui %26 : vector<16x32xi1> to vector<16x32xi32>
    %28 = arith.sitofp %27 : vector<16x32xi32> to vector<16x32xf32>
    %29 = arith.truncf %28 : vector<16x32xf32> to vector<16x32xbf16>
    %c0_11 = arith.constant 0 : index
    %c0_12 = arith.constant 0 : index
    %30 = vector.load %arg7[%c0_11, %c0_12] : memref<16x1xi32, #tpu.memory_space<vmem>>, vector<16x1xi32>
    %31 = tpu.iota {dimensions = array<i32: 1>} : vector<16x8xi32>
    %32 = vector.broadcast %30 : vector<16x1xi32> to vector<16x8xi32>
    %33 = arith.cmpi eq, %31, %32 : vector<16x8xi32>
    %34 = arith.extui %33 : vector<16x8xi1> to vector<16x8xi32>
    %35 = arith.sitofp %34 : vector<16x8xi32> to vector<16x8xf32>
    %c0_13 = arith.constant 0 : index
    %c0_14 = arith.constant 0 : index
    %36 = vector.load %arg8[%c0_13, %c0_14] : memref<1x16xi32, #tpu.memory_space<vmem>>, vector<1x16xi32>
    %37 = tpu.iota {dimensions = array<i32: 0>} : vector<8x16xi32>
    %38 = vector.broadcast %36 : vector<1x16xi32> to vector<8x16xi32>
    %39 = arith.cmpi eq, %37, %38 : vector<8x16xi32>
    %40 = arith.extui %39 : vector<8x16xi1> to vector<8x16xi32>
    %41 = arith.sitofp %40 : vector<8x16xi32> to vector<8x16xf32>
    %c0_15 = arith.constant 0 : index
    %c0_16 = arith.constant 0 : index
    %42 = vector.load %arg3[%c0_15, %c0_16] : memref<32x1xi32, #tpu.memory_space<vmem>>, vector<32x1xi32>
    %43 = tpu.iota {dimensions = array<i32: 1>} : vector<32x8xi32>
    %44 = vector.broadcast %42 : vector<32x1xi32> to vector<32x8xi32>
    %45 = arith.cmpi eq, %43, %44 : vector<32x8xi32>
    %46 = arith.extui %45 : vector<32x8xi1> to vector<32x8xi32>
    %47 = arith.sitofp %46 : vector<32x8xi32> to vector<32x8xf32>
    %c0_17 = arith.constant 0 : index
    %c0_18 = arith.constant 0 : index
    %48 = vector.load %arg4[%c0_17, %c0_18] : memref<32x1xi32, #tpu.memory_space<vmem>>, vector<32x1xi32>
    %49 = tpu.iota {dimensions = array<i32: 1>} : vector<32x8xi32>
    %50 = vector.broadcast %48 : vector<32x1xi32> to vector<32x8xi32>
    %51 = arith.cmpi eq, %49, %50 : vector<32x8xi32>
    %52 = arith.extui %51 : vector<32x8xi1> to vector<32x8xi32>
    %53 = arith.sitofp %52 : vector<32x8xi32> to vector<32x8xf32>
    %54 = arith.addf %47, %53 : vector<32x8xf32>
    %cst_19 = arith.constant dense<0.000000e+00> : vector<16x128xf32>
    %55 = tpu.matmul %35, %15, %cst_19 {dimension_numbers = #tpu.dot_dimension_numbers<[1], [0], [0], [1], [0, 0, 1, 1], [], []>} : vector<16x8xf32>, vector<8x128xf32>, vector<16x128xf32> -> vector<16x128xf32>
    %56 = arith.addf %14, %55 : vector<16x128xf32>
    %c0_20 = arith.constant 0 : index
    %c0_21 = arith.constant 0 : index
    %c0_22 = arith.constant 0 : index
    %57 = vector.load %arg10[%c0_20, %c0_21, %c0_22] : memref<3x8x128xf32, #tpu.memory_space<vmem>>, vector<1x8x128xf32>
    %58 = vector.shape_cast %57 : vector<1x8x128xf32> to vector<8x128xf32>
    %cst_23 = arith.constant dense<0.000000e+00> : vector<32x128xf32>
    %59 = tpu.matmul %54, %58, %cst_23 {dimension_numbers = #tpu.dot_dimension_numbers<[1], [0], [0], [1], [0, 0, 1, 1], [], []>} : vector<32x8xf32>, vector<8x128xf32>, vector<32x128xf32> -> vector<32x128xf32>
    %60 = arith.truncf %56 : vector<16x128xf32> to vector<16x128xbf16>
    %cst_24 = arith.constant dense<0.000000e+00> : vector<32x128xf32>
    %61 = tpu.matmul %22, %60, %cst_24 {dimension_numbers = #tpu.dot_dimension_numbers<[1], [0], [0], [1], [0, 0, 1, 1], [], []>} : vector<32x16xbf16>, vector<16x128xbf16>, vector<32x128xf32> -> vector<32x128xf32>
    %62 = arith.addf %61, %59 : vector<32x128xf32>
    %cst_25 = arith.constant 0.000000e+00 : f32
    %63 = vector.broadcast %cst_25 : f32 to vector<32x128xf32>
    %64 = arith.maximumf %62, %63 : vector<32x128xf32>
    %65 = arith.truncf %64 : vector<32x128xf32> to vector<32x128xbf16>
    %cst_26 = arith.constant dense<0.000000e+00> : vector<16x128xf32>
    %66 = tpu.matmul %29, %65, %cst_26 {dimension_numbers = #tpu.dot_dimension_numbers<[1], [0], [0], [1], [0, 0, 1, 1], [], []>} : vector<16x32xbf16>, vector<32x128xbf16>, vector<16x128xf32> -> vector<16x128xf32>
    %c0_27 = arith.constant 0 : index
    %67 = memref.load %arg0[%c0_27] : memref<3xf32, #tpu.memory_space<smem>>
    %68 = vector.broadcast %67 : f32 to vector<16x128xf32>
    %69 = arith.mulf %68, %56 : vector<16x128xf32>
    %70 = arith.addf %69, %66 : vector<16x128xf32>
    %c0_28 = arith.constant 0 : index
    %c0_29 = arith.constant 0 : index
    %c0_30 = arith.constant 0 : index
    %71 = vector.load %arg12[%c0_28, %c0_29, %c0_30] : memref<3x128x128xf32, #tpu.memory_space<vmem>>, vector<1x128x128xf32>
    %72 = vector.shape_cast %71 : vector<1x128x128xf32> to vector<128x128xf32>
    %c0_31 = arith.constant 0 : index
    %c0_32 = arith.constant 0 : index
    %c0_33 = arith.constant 0 : index
    %73 = vector.load %arg13[%c0_31, %c0_32, %c0_33] : memref<3x1x128xf32, #tpu.memory_space<vmem>>, vector<1x1x128xf32>
    %74 = vector.shape_cast %73 : vector<1x1x128xf32> to vector<1x128xf32>
    %c0_34 = arith.constant 0 : index
    %c0_35 = arith.constant 0 : index
    %c0_36 = arith.constant 0 : index
    %75 = vector.load %arg14[%c0_34, %c0_35, %c0_36] : memref<3x1x128xf32, #tpu.memory_space<vmem>>, vector<1x1x128xf32>
    %76 = vector.shape_cast %75 : vector<1x1x128xf32> to vector<1x128xf32>
    %c0_37 = arith.constant 0 : index
    %c0_38 = arith.constant 0 : index
    %c0_39 = arith.constant 0 : index
    %77 = vector.load %arg15[%c0_37, %c0_38, %c0_39] : memref<3x1x128xf32, #tpu.memory_space<vmem>>, vector<1x1x128xf32>
    %78 = vector.shape_cast %77 : vector<1x1x128xf32> to vector<1x128xf32>
    %c0_40 = arith.constant 0 : index
    %c0_41 = arith.constant 0 : index
    %c0_42 = arith.constant 0 : index
    %79 = vector.load %arg16[%c0_40, %c0_41, %c0_42] : memref<3x128x128xf32, #tpu.memory_space<vmem>>, vector<1x128x128xf32>
    %80 = vector.shape_cast %79 : vector<1x128x128xf32> to vector<128x128xf32>
    %c0_43 = arith.constant 0 : index
    %c0_44 = arith.constant 0 : index
    %c0_45 = arith.constant 0 : index
    %81 = vector.load %arg17[%c0_43, %c0_44, %c0_45] : memref<3x1x128xf32, #tpu.memory_space<vmem>>, vector<1x1x128xf32>
    %82 = vector.shape_cast %81 : vector<1x1x128xf32> to vector<1x128xf32>
    %c0_46 = arith.constant 0 : index
    %c0_47 = arith.constant 0 : index
    %c0_48 = arith.constant 0 : index
    %83 = vector.load %arg18[%c0_46, %c0_47, %c0_48] : memref<3x1x128xf32, #tpu.memory_space<vmem>>, vector<1x1x128xf32>
    %84 = vector.shape_cast %83 : vector<1x1x128xf32> to vector<1x128xf32>
    %c0_49 = arith.constant 0 : index
    %c0_50 = arith.constant 0 : index
    %c0_51 = arith.constant 0 : index
    %85 = vector.load %arg19[%c0_49, %c0_50, %c0_51] : memref<3x1x128xf32, #tpu.memory_space<vmem>>, vector<1x1x128xf32>
    %86 = vector.shape_cast %85 : vector<1x1x128xf32> to vector<1x128xf32>
    %cst_52 = arith.constant dense<0.000000e+00> : vector<16x128xf32>
    %87 = tpu.matmul %70, %72, %cst_52 {dimension_numbers = #tpu.dot_dimension_numbers<[1], [0], [0], [1], [0, 0, 1, 1], [], []>} : vector<16x128xf32>, vector<128x128xf32>, vector<16x128xf32> -> vector<16x128xf32>
    %88 = vector.broadcast %74 : vector<1x128xf32> to vector<16x128xf32>
    %89 = arith.addf %87, %88 : vector<16x128xf32>
    %90 = vector.broadcast %76 : vector<1x128xf32> to vector<16x128xf32>
    %91 = arith.mulf %89, %90 : vector<16x128xf32>
    %92 = vector.broadcast %78 : vector<1x128xf32> to vector<16x128xf32>
    %93 = arith.addf %91, %92 : vector<16x128xf32>
    %cst_53 = arith.constant 0.000000e+00 : f32
    %94 = vector.broadcast %cst_53 : f32 to vector<16x128xf32>
    %95 = arith.maximumf %93, %94 : vector<16x128xf32>
    %cst_54 = arith.constant dense<0.000000e+00> : vector<16x128xf32>
    %96 = tpu.matmul %95, %80, %cst_54 {dimension_numbers = #tpu.dot_dimension_numbers<[1], [0], [0], [1], [0, 0, 1, 1], [], []>} : vector<16x128xf32>, vector<128x128xf32>, vector<16x128xf32> -> vector<16x128xf32>
    %97 = vector.broadcast %82 : vector<1x128xf32> to vector<16x128xf32>
    %98 = arith.addf %96, %97 : vector<16x128xf32>
    %99 = vector.broadcast %84 : vector<1x128xf32> to vector<16x128xf32>
    %100 = arith.mulf %98, %99 : vector<16x128xf32>
    %101 = vector.broadcast %86 : vector<1x128xf32> to vector<16x128xf32>
    %102 = arith.addf %100, %101 : vector<16x128xf32>
    %cst_55 = arith.constant 0.000000e+00 : f32
    %103 = vector.broadcast %cst_55 : f32 to vector<16x128xf32>
    %104 = arith.maximumf %102, %103 : vector<16x128xf32>
    %cst_56 = arith.constant dense<0.000000e+00> : vector<8x128xf32>
    %105 = tpu.matmul %41, %56, %cst_56 {dimension_numbers = #tpu.dot_dimension_numbers<[1], [0], [0], [1], [0, 0, 1, 1], [], []>} : vector<8x16xf32>, vector<16x128xf32>, vector<8x128xf32> -> vector<8x128xf32>
    %106 = arith.addf %105, %15 : vector<8x128xf32>
    %c0_57 = arith.constant 0 : index
    %c0_58 = arith.constant 0 : index
    %c0_59 = arith.constant 0 : index
    %107 = vector.load %arg20[%c0_57, %c0_58, %c0_59] : memref<2x128x128xf32, #tpu.memory_space<vmem>>, vector<1x128x128xf32>
    %108 = vector.shape_cast %107 : vector<1x128x128xf32> to vector<128x128xf32>
    %c0_60 = arith.constant 0 : index
    %c0_61 = arith.constant 0 : index
    %c0_62 = arith.constant 0 : index
    %109 = vector.load %arg21[%c0_60, %c0_61, %c0_62] : memref<2x1x128xf32, #tpu.memory_space<vmem>>, vector<1x1x128xf32>
    %110 = vector.shape_cast %109 : vector<1x1x128xf32> to vector<1x128xf32>
    %c0_63 = arith.constant 0 : index
    %c0_64 = arith.constant 0 : index
    %c0_65 = arith.constant 0 : index
    %111 = vector.load %arg22[%c0_63, %c0_64, %c0_65] : memref<2x1x128xf32, #tpu.memory_space<vmem>>, vector<1x1x128xf32>
    %112 = vector.shape_cast %111 : vector<1x1x128xf32> to vector<1x128xf32>
    %c0_66 = arith.constant 0 : index
    %c0_67 = arith.constant 0 : index
    %c0_68 = arith.constant 0 : index
    %113 = vector.load %arg23[%c0_66, %c0_67, %c0_68] : memref<2x1x128xf32, #tpu.memory_space<vmem>>, vector<1x1x128xf32>
    %114 = vector.shape_cast %113 : vector<1x1x128xf32> to vector<1x128xf32>
    %c0_69 = arith.constant 0 : index
    %c0_70 = arith.constant 0 : index
    %c0_71 = arith.constant 0 : index
    %115 = vector.load %arg24[%c0_69, %c0_70, %c0_71] : memref<2x128x128xf32, #tpu.memory_space<vmem>>, vector<1x128x128xf32>
    %116 = vector.shape_cast %115 : vector<1x128x128xf32> to vector<128x128xf32>
    %c0_72 = arith.constant 0 : index
    %c0_73 = arith.constant 0 : index
    %c0_74 = arith.constant 0 : index
    %117 = vector.load %arg25[%c0_72, %c0_73, %c0_74] : memref<2x1x128xf32, #tpu.memory_space<vmem>>, vector<1x1x128xf32>
    %118 = vector.shape_cast %117 : vector<1x1x128xf32> to vector<1x128xf32>
    %c0_75 = arith.constant 0 : index
    %c0_76 = arith.constant 0 : index
    %c0_77 = arith.constant 0 : index
    %119 = vector.load %arg26[%c0_75, %c0_76, %c0_77] : memref<2x1x128xf32, #tpu.memory_space<vmem>>, vector<1x1x128xf32>
    %120 = vector.shape_cast %119 : vector<1x1x128xf32> to vector<1x128xf32>
    %c0_78 = arith.constant 0 : index
    %c0_79 = arith.constant 0 : index
    %c0_80 = arith.constant 0 : index
    %121 = vector.load %arg27[%c0_78, %c0_79, %c0_80] : memref<2x1x128xf32, #tpu.memory_space<vmem>>, vector<1x1x128xf32>
    %122 = vector.shape_cast %121 : vector<1x1x128xf32> to vector<1x128xf32>
    %cst_81 = arith.constant dense<0.000000e+00> : vector<8x128xf32>
    %123 = tpu.matmul %106, %108, %cst_81 {dimension_numbers = #tpu.dot_dimension_numbers<[1], [0], [0], [1], [0, 0, 1, 1], [], []>} : vector<8x128xf32>, vector<128x128xf32>, vector<8x128xf32> -> vector<8x128xf32>
    %124 = vector.broadcast %110 : vector<1x128xf32> to vector<8x128xf32>
    %125 = arith.addf %123, %124 : vector<8x128xf32>
    %126 = vector.broadcast %112 : vector<1x128xf32> to vector<8x128xf32>
    %127 = arith.mulf %125, %126 : vector<8x128xf32>
    %128 = vector.broadcast %114 : vector<1x128xf32> to vector<8x128xf32>
    %129 = arith.addf %127, %128 : vector<8x128xf32>
    %cst_82 = arith.constant 0.000000e+00 : f32
    %130 = vector.broadcast %cst_82 : f32 to vector<8x128xf32>
    %131 = arith.maximumf %129, %130 : vector<8x128xf32>
    %cst_83 = arith.constant dense<0.000000e+00> : vector<8x128xf32>
    %132 = tpu.matmul %131, %116, %cst_83 {dimension_numbers = #tpu.dot_dimension_numbers<[1], [0], [0], [1], [0, 0, 1, 1], [], []>} : vector<8x128xf32>, vector<128x128xf32>, vector<8x128xf32> -> vector<8x128xf32>
    %133 = vector.broadcast %118 : vector<1x128xf32> to vector<8x128xf32>
    %134 = arith.addf %132, %133 : vector<8x128xf32>
    %135 = vector.broadcast %120 : vector<1x128xf32> to vector<8x128xf32>
    %136 = arith.mulf %134, %135 : vector<8x128xf32>
    %137 = vector.broadcast %122 : vector<1x128xf32> to vector<8x128xf32>
    %138 = arith.addf %136, %137 : vector<8x128xf32>
    %cst_84 = arith.constant 0.000000e+00 : f32
    %139 = vector.broadcast %cst_84 : f32 to vector<8x128xf32>
    %140 = arith.maximumf %138, %139 : vector<8x128xf32>
    %cst_85 = arith.constant dense<0.000000e+00> : vector<16x128xf32>
    %141 = tpu.matmul %35, %140, %cst_85 {dimension_numbers = #tpu.dot_dimension_numbers<[1], [0], [0], [1], [0, 0, 1, 1], [], []>} : vector<16x8xf32>, vector<8x128xf32>, vector<16x128xf32> -> vector<16x128xf32>
    %142 = arith.addf %104, %141 : vector<16x128xf32>
    %c1 = arith.constant 1 : index
    %c0_86 = arith.constant 0 : index
    %c0_87 = arith.constant 0 : index
    %143 = vector.load %arg10[%c1, %c0_86, %c0_87] : memref<3x8x128xf32, #tpu.memory_space<vmem>>, vector<1x8x128xf32>
    %144 = vector.shape_cast %143 : vector<1x8x128xf32> to vector<8x128xf32>
    %cst_88 = arith.constant dense<0.000000e+00> : vector<32x128xf32>
    %145 = tpu.matmul %54, %144, %cst_88 {dimension_numbers = #tpu.dot_dimension_numbers<[1], [0], [0], [1], [0, 0, 1, 1], [], []>} : vector<32x8xf32>, vector<8x128xf32>, vector<32x128xf32> -> vector<32x128xf32>
    %146 = arith.truncf %142 : vector<16x128xf32> to vector<16x128xbf16>
    %cst_89 = arith.constant dense<0.000000e+00> : vector<32x128xf32>
    %147 = tpu.matmul %22, %146, %cst_89 {dimension_numbers = #tpu.dot_dimension_numbers<[1], [0], [0], [1], [0, 0, 1, 1], [], []>} : vector<32x16xbf16>, vector<16x128xbf16>, vector<32x128xf32> -> vector<32x128xf32>
    %148 = arith.addf %147, %145 : vector<32x128xf32>
    %cst_90 = arith.constant 0.000000e+00 : f32
    %149 = vector.broadcast %cst_90 : f32 to vector<32x128xf32>
    %150 = arith.maximumf %148, %149 : vector<32x128xf32>
    %151 = arith.truncf %150 : vector<32x128xf32> to vector<32x128xbf16>
    %cst_91 = arith.constant dense<0.000000e+00> : vector<16x128xf32>
    %152 = tpu.matmul %29, %151, %cst_91 {dimension_numbers = #tpu.dot_dimension_numbers<[1], [0], [0], [1], [0, 0, 1, 1], [], []>} : vector<16x32xbf16>, vector<32x128xbf16>, vector<16x128xf32> -> vector<16x128xf32>
    %c1_92 = arith.constant 1 : index
    %153 = memref.load %arg0[%c1_92] : memref<3xf32, #tpu.memory_space<smem>>
    %154 = vector.broadcast %153 : f32 to vector<16x128xf32>
    %155 = arith.mulf %154, %142 : vector<16x128xf32>
    %156 = arith.addf %155, %152 : vector<16x128xf32>
    %c1_93 = arith.constant 1 : index
    %c0_94 = arith.constant 0 : index
    %c0_95 = arith.constant 0 : index
    %157 = vector.load %arg12[%c1_93, %c0_94, %c0_95] : memref<3x128x128xf32, #tpu.memory_space<vmem>>, vector<1x128x128xf32>
    %158 = vector.shape_cast %157 : vector<1x128x128xf32> to vector<128x128xf32>
    %c1_96 = arith.constant 1 : index
    %c0_97 = arith.constant 0 : index
    %c0_98 = arith.constant 0 : index
    %159 = vector.load %arg13[%c1_96, %c0_97, %c0_98] : memref<3x1x128xf32, #tpu.memory_space<vmem>>, vector<1x1x128xf32>
    %160 = vector.shape_cast %159 : vector<1x1x128xf32> to vector<1x128xf32>
    %c1_99 = arith.constant 1 : index
    %c0_100 = arith.constant 0 : index
    %c0_101 = arith.constant 0 : index
    %161 = vector.load %arg14[%c1_99, %c0_100, %c0_101] : memref<3x1x128xf32, #tpu.memory_space<vmem>>, vector<1x1x128xf32>
    %162 = vector.shape_cast %161 : vector<1x1x128xf32> to vector<1x128xf32>
    %c1_102 = arith.constant 1 : index
    %c0_103 = arith.constant 0 : index
    %c0_104 = arith.constant 0 : index
    %163 = vector.load %arg15[%c1_102, %c0_103, %c0_104] : memref<3x1x128xf32, #tpu.memory_space<vmem>>, vector<1x1x128xf32>
    %164 = vector.shape_cast %163 : vector<1x1x128xf32> to vector<1x128xf32>
    %c1_105 = arith.constant 1 : index
    %c0_106 = arith.constant 0 : index
    %c0_107 = arith.constant 0 : index
    %165 = vector.load %arg16[%c1_105, %c0_106, %c0_107] : memref<3x128x128xf32, #tpu.memory_space<vmem>>, vector<1x128x128xf32>
    %166 = vector.shape_cast %165 : vector<1x128x128xf32> to vector<128x128xf32>
    %c1_108 = arith.constant 1 : index
    %c0_109 = arith.constant 0 : index
    %c0_110 = arith.constant 0 : index
    %167 = vector.load %arg17[%c1_108, %c0_109, %c0_110] : memref<3x1x128xf32, #tpu.memory_space<vmem>>, vector<1x1x128xf32>
    %168 = vector.shape_cast %167 : vector<1x1x128xf32> to vector<1x128xf32>
    %c1_111 = arith.constant 1 : index
    %c0_112 = arith.constant 0 : index
    %c0_113 = arith.constant 0 : index
    %169 = vector.load %arg18[%c1_111, %c0_112, %c0_113] : memref<3x1x128xf32, #tpu.memory_space<vmem>>, vector<1x1x128xf32>
    %170 = vector.shape_cast %169 : vector<1x1x128xf32> to vector<1x128xf32>
    %c1_114 = arith.constant 1 : index
    %c0_115 = arith.constant 0 : index
    %c0_116 = arith.constant 0 : index
    %171 = vector.load %arg19[%c1_114, %c0_115, %c0_116] : memref<3x1x128xf32, #tpu.memory_space<vmem>>, vector<1x1x128xf32>
    %172 = vector.shape_cast %171 : vector<1x1x128xf32> to vector<1x128xf32>
    %cst_117 = arith.constant dense<0.000000e+00> : vector<16x128xf32>
    %173 = tpu.matmul %156, %158, %cst_117 {dimension_numbers = #tpu.dot_dimension_numbers<[1], [0], [0], [1], [0, 0, 1, 1], [], []>} : vector<16x128xf32>, vector<128x128xf32>, vector<16x128xf32> -> vector<16x128xf32>
    %174 = vector.broadcast %160 : vector<1x128xf32> to vector<16x128xf32>
    %175 = arith.addf %173, %174 : vector<16x128xf32>
    %176 = vector.broadcast %162 : vector<1x128xf32> to vector<16x128xf32>
    %177 = arith.mulf %175, %176 : vector<16x128xf32>
    %178 = vector.broadcast %164 : vector<1x128xf32> to vector<16x128xf32>
    %179 = arith.addf %177, %178 : vector<16x128xf32>
    %cst_118 = arith.constant 0.000000e+00 : f32
    %180 = vector.broadcast %cst_118 : f32 to vector<16x128xf32>
    %181 = arith.maximumf %179, %180 : vector<16x128xf32>
    %cst_119 = arith.constant dense<0.000000e+00> : vector<16x128xf32>
    %182 = tpu.matmul %181, %166, %cst_119 {dimension_numbers = #tpu.dot_dimension_numbers<[1], [0], [0], [1], [0, 0, 1, 1], [], []>} : vector<16x128xf32>, vector<128x128xf32>, vector<16x128xf32> -> vector<16x128xf32>
    %183 = vector.broadcast %168 : vector<1x128xf32> to vector<16x128xf32>
    %184 = arith.addf %182, %183 : vector<16x128xf32>
    %185 = vector.broadcast %170 : vector<1x128xf32> to vector<16x128xf32>
    %186 = arith.mulf %184, %185 : vector<16x128xf32>
    %187 = vector.broadcast %172 : vector<1x128xf32> to vector<16x128xf32>
    %188 = arith.addf %186, %187 : vector<16x128xf32>
    %cst_120 = arith.constant 0.000000e+00 : f32
    %189 = vector.broadcast %cst_120 : f32 to vector<16x128xf32>
    %190 = arith.maximumf %188, %189 : vector<16x128xf32>
    %cst_121 = arith.constant dense<0.000000e+00> : vector<8x128xf32>
    %191 = tpu.matmul %41, %142, %cst_121 {dimension_numbers = #tpu.dot_dimension_numbers<[1], [0], [0], [1], [0, 0, 1, 1], [], []>} : vector<8x16xf32>, vector<16x128xf32>, vector<8x128xf32> -> vector<8x128xf32>
    %192 = arith.addf %191, %140 : vector<8x128xf32>
    %c1_122 = arith.constant 1 : index
    %c0_123 = arith.constant 0 : index
    %c0_124 = arith.constant 0 : index
    %193 = vector.load %arg20[%c1_122, %c0_123, %c0_124] : memref<2x128x128xf32, #tpu.memory_space<vmem>>, vector<1x128x128xf32>
    %194 = vector.shape_cast %193 : vector<1x128x128xf32> to vector<128x128xf32>
    %c1_125 = arith.constant 1 : index
    %c0_126 = arith.constant 0 : index
    %c0_127 = arith.constant 0 : index
    %195 = vector.load %arg21[%c1_125, %c0_126, %c0_127] : memref<2x1x128xf32, #tpu.memory_space<vmem>>, vector<1x1x128xf32>
    %196 = vector.shape_cast %195 : vector<1x1x128xf32> to vector<1x128xf32>
    %c1_128 = arith.constant 1 : index
    %c0_129 = arith.constant 0 : index
    %c0_130 = arith.constant 0 : index
    %197 = vector.load %arg22[%c1_128, %c0_129, %c0_130] : memref<2x1x128xf32, #tpu.memory_space<vmem>>, vector<1x1x128xf32>
    %198 = vector.shape_cast %197 : vector<1x1x128xf32> to vector<1x128xf32>
    %c1_131 = arith.constant 1 : index
    %c0_132 = arith.constant 0 : index
    %c0_133 = arith.constant 0 : index
    %199 = vector.load %arg23[%c1_131, %c0_132, %c0_133] : memref<2x1x128xf32, #tpu.memory_space<vmem>>, vector<1x1x128xf32>
    %200 = vector.shape_cast %199 : vector<1x1x128xf32> to vector<1x128xf32>
    %c1_134 = arith.constant 1 : index
    %c0_135 = arith.constant 0 : index
    %c0_136 = arith.constant 0 : index
    %201 = vector.load %arg24[%c1_134, %c0_135, %c0_136] : memref<2x128x128xf32, #tpu.memory_space<vmem>>, vector<1x128x128xf32>
    %202 = vector.shape_cast %201 : vector<1x128x128xf32> to vector<128x128xf32>
    %c1_137 = arith.constant 1 : index
    %c0_138 = arith.constant 0 : index
    %c0_139 = arith.constant 0 : index
    %203 = vector.load %arg25[%c1_137, %c0_138, %c0_139] : memref<2x1x128xf32, #tpu.memory_space<vmem>>, vector<1x1x128xf32>
    %204 = vector.shape_cast %203 : vector<1x1x128xf32> to vector<1x128xf32>
    %c1_140 = arith.constant 1 : index
    %c0_141 = arith.constant 0 : index
    %c0_142 = arith.constant 0 : index
    %205 = vector.load %arg26[%c1_140, %c0_141, %c0_142] : memref<2x1x128xf32, #tpu.memory_space<vmem>>, vector<1x1x128xf32>
    %206 = vector.shape_cast %205 : vector<1x1x128xf32> to vector<1x128xf32>
    %c1_143 = arith.constant 1 : index
    %c0_144 = arith.constant 0 : index
    %c0_145 = arith.constant 0 : index
    %207 = vector.load %arg27[%c1_143, %c0_144, %c0_145] : memref<2x1x128xf32, #tpu.memory_space<vmem>>, vector<1x1x128xf32>
    %208 = vector.shape_cast %207 : vector<1x1x128xf32> to vector<1x128xf32>
    %cst_146 = arith.constant dense<0.000000e+00> : vector<8x128xf32>
    %209 = tpu.matmul %192, %194, %cst_146 {dimension_numbers = #tpu.dot_dimension_numbers<[1], [0], [0], [1], [0, 0, 1, 1], [], []>} : vector<8x128xf32>, vector<128x128xf32>, vector<8x128xf32> -> vector<8x128xf32>
    %210 = vector.broadcast %196 : vector<1x128xf32> to vector<8x128xf32>
    %211 = arith.addf %209, %210 : vector<8x128xf32>
    %212 = vector.broadcast %198 : vector<1x128xf32> to vector<8x128xf32>
    %213 = arith.mulf %211, %212 : vector<8x128xf32>
    %214 = vector.broadcast %200 : vector<1x128xf32> to vector<8x128xf32>
    %215 = arith.addf %213, %214 : vector<8x128xf32>
    %cst_147 = arith.constant 0.000000e+00 : f32
    %216 = vector.broadcast %cst_147 : f32 to vector<8x128xf32>
    %217 = arith.maximumf %215, %216 : vector<8x128xf32>
    %cst_148 = arith.constant dense<0.000000e+00> : vector<8x128xf32>
    %218 = tpu.matmul %217, %202, %cst_148 {dimension_numbers = #tpu.dot_dimension_numbers<[1], [0], [0], [1], [0, 0, 1, 1], [], []>} : vector<8x128xf32>, vector<128x128xf32>, vector<8x128xf32> -> vector<8x128xf32>
    %219 = vector.broadcast %204 : vector<1x128xf32> to vector<8x128xf32>
    %220 = arith.addf %218, %219 : vector<8x128xf32>
    %221 = vector.broadcast %206 : vector<1x128xf32> to vector<8x128xf32>
    %222 = arith.mulf %220, %221 : vector<8x128xf32>
    %223 = vector.broadcast %208 : vector<1x128xf32> to vector<8x128xf32>
    %224 = arith.addf %222, %223 : vector<8x128xf32>
    %cst_149 = arith.constant 0.000000e+00 : f32
    %225 = vector.broadcast %cst_149 : f32 to vector<8x128xf32>
    %226 = arith.maximumf %224, %225 : vector<8x128xf32>
    %cst_150 = arith.constant dense<0.000000e+00> : vector<16x128xf32>
    %227 = tpu.matmul %35, %226, %cst_150 {dimension_numbers = #tpu.dot_dimension_numbers<[1], [0], [0], [1], [0, 0, 1, 1], [], []>} : vector<16x8xf32>, vector<8x128xf32>, vector<16x128xf32> -> vector<16x128xf32>
    %228 = arith.addf %190, %227 : vector<16x128xf32>
    %c2 = arith.constant 2 : index
    %c0_151 = arith.constant 0 : index
    %c0_152 = arith.constant 0 : index
    %229 = vector.load %arg10[%c2, %c0_151, %c0_152] : memref<3x8x128xf32, #tpu.memory_space<vmem>>, vector<1x8x128xf32>
    %230 = vector.shape_cast %229 : vector<1x8x128xf32> to vector<8x128xf32>
    %cst_153 = arith.constant dense<0.000000e+00> : vector<32x128xf32>
    %231 = tpu.matmul %54, %230, %cst_153 {dimension_numbers = #tpu.dot_dimension_numbers<[1], [0], [0], [1], [0, 0, 1, 1], [], []>} : vector<32x8xf32>, vector<8x128xf32>, vector<32x128xf32> -> vector<32x128xf32>
    %232 = arith.truncf %228 : vector<16x128xf32> to vector<16x128xbf16>
    %cst_154 = arith.constant dense<0.000000e+00> : vector<32x128xf32>
    %233 = tpu.matmul %22, %232, %cst_154 {dimension_numbers = #tpu.dot_dimension_numbers<[1], [0], [0], [1], [0, 0, 1, 1], [], []>} : vector<32x16xbf16>, vector<16x128xbf16>, vector<32x128xf32> -> vector<32x128xf32>
    %234 = arith.addf %233, %231 : vector<32x128xf32>
    %cst_155 = arith.constant 0.000000e+00 : f32
    %235 = vector.broadcast %cst_155 : f32 to vector<32x128xf32>
    %236 = arith.maximumf %234, %235 : vector<32x128xf32>
    %237 = arith.truncf %236 : vector<32x128xf32> to vector<32x128xbf16>
    %cst_156 = arith.constant dense<0.000000e+00> : vector<16x128xf32>
    %238 = tpu.matmul %29, %237, %cst_156 {dimension_numbers = #tpu.dot_dimension_numbers<[1], [0], [0], [1], [0, 0, 1, 1], [], []>} : vector<16x32xbf16>, vector<32x128xbf16>, vector<16x128xf32> -> vector<16x128xf32>
    %c2_157 = arith.constant 2 : index
    %239 = memref.load %arg0[%c2_157] : memref<3xf32, #tpu.memory_space<smem>>
    %240 = vector.broadcast %239 : f32 to vector<16x128xf32>
    %241 = arith.mulf %240, %228 : vector<16x128xf32>
    %242 = arith.addf %241, %238 : vector<16x128xf32>
    %c2_158 = arith.constant 2 : index
    %c0_159 = arith.constant 0 : index
    %c0_160 = arith.constant 0 : index
    %243 = vector.load %arg12[%c2_158, %c0_159, %c0_160] : memref<3x128x128xf32, #tpu.memory_space<vmem>>, vector<1x128x128xf32>
    %244 = vector.shape_cast %243 : vector<1x128x128xf32> to vector<128x128xf32>
    %c2_161 = arith.constant 2 : index
    %c0_162 = arith.constant 0 : index
    %c0_163 = arith.constant 0 : index
    %245 = vector.load %arg13[%c2_161, %c0_162, %c0_163] : memref<3x1x128xf32, #tpu.memory_space<vmem>>, vector<1x1x128xf32>
    %246 = vector.shape_cast %245 : vector<1x1x128xf32> to vector<1x128xf32>
    %c2_164 = arith.constant 2 : index
    %c0_165 = arith.constant 0 : index
    %c0_166 = arith.constant 0 : index
    %247 = vector.load %arg14[%c2_164, %c0_165, %c0_166] : memref<3x1x128xf32, #tpu.memory_space<vmem>>, vector<1x1x128xf32>
    %248 = vector.shape_cast %247 : vector<1x1x128xf32> to vector<1x128xf32>
    %c2_167 = arith.constant 2 : index
    %c0_168 = arith.constant 0 : index
    %c0_169 = arith.constant 0 : index
    %249 = vector.load %arg15[%c2_167, %c0_168, %c0_169] : memref<3x1x128xf32, #tpu.memory_space<vmem>>, vector<1x1x128xf32>
    %250 = vector.shape_cast %249 : vector<1x1x128xf32> to vector<1x128xf32>
    %c2_170 = arith.constant 2 : index
    %c0_171 = arith.constant 0 : index
    %c0_172 = arith.constant 0 : index
    %251 = vector.load %arg16[%c2_170, %c0_171, %c0_172] : memref<3x128x128xf32, #tpu.memory_space<vmem>>, vector<1x128x128xf32>
    %252 = vector.shape_cast %251 : vector<1x128x128xf32> to vector<128x128xf32>
    %c2_173 = arith.constant 2 : index
    %c0_174 = arith.constant 0 : index
    %c0_175 = arith.constant 0 : index
    %253 = vector.load %arg17[%c2_173, %c0_174, %c0_175] : memref<3x1x128xf32, #tpu.memory_space<vmem>>, vector<1x1x128xf32>
    %254 = vector.shape_cast %253 : vector<1x1x128xf32> to vector<1x128xf32>
    %c2_176 = arith.constant 2 : index
    %c0_177 = arith.constant 0 : index
    %c0_178 = arith.constant 0 : index
    %255 = vector.load %arg18[%c2_176, %c0_177, %c0_178] : memref<3x1x128xf32, #tpu.memory_space<vmem>>, vector<1x1x128xf32>
    %256 = vector.shape_cast %255 : vector<1x1x128xf32> to vector<1x128xf32>
    %c2_179 = arith.constant 2 : index
    %c0_180 = arith.constant 0 : index
    %c0_181 = arith.constant 0 : index
    %257 = vector.load %arg19[%c2_179, %c0_180, %c0_181] : memref<3x1x128xf32, #tpu.memory_space<vmem>>, vector<1x1x128xf32>
    %258 = vector.shape_cast %257 : vector<1x1x128xf32> to vector<1x128xf32>
    %cst_182 = arith.constant dense<0.000000e+00> : vector<16x128xf32>
    %259 = tpu.matmul %242, %244, %cst_182 {dimension_numbers = #tpu.dot_dimension_numbers<[1], [0], [0], [1], [0, 0, 1, 1], [], []>} : vector<16x128xf32>, vector<128x128xf32>, vector<16x128xf32> -> vector<16x128xf32>
    %260 = vector.broadcast %246 : vector<1x128xf32> to vector<16x128xf32>
    %261 = arith.addf %259, %260 : vector<16x128xf32>
    %262 = vector.broadcast %248 : vector<1x128xf32> to vector<16x128xf32>
    %263 = arith.mulf %261, %262 : vector<16x128xf32>
    %264 = vector.broadcast %250 : vector<1x128xf32> to vector<16x128xf32>
    %265 = arith.addf %263, %264 : vector<16x128xf32>
    %cst_183 = arith.constant 0.000000e+00 : f32
    %266 = vector.broadcast %cst_183 : f32 to vector<16x128xf32>
    %267 = arith.maximumf %265, %266 : vector<16x128xf32>
    %cst_184 = arith.constant dense<0.000000e+00> : vector<16x128xf32>
    %268 = tpu.matmul %267, %252, %cst_184 {dimension_numbers = #tpu.dot_dimension_numbers<[1], [0], [0], [1], [0, 0, 1, 1], [], []>} : vector<16x128xf32>, vector<128x128xf32>, vector<16x128xf32> -> vector<16x128xf32>
    %269 = vector.broadcast %254 : vector<1x128xf32> to vector<16x128xf32>
    %270 = arith.addf %268, %269 : vector<16x128xf32>
    %271 = vector.broadcast %256 : vector<1x128xf32> to vector<16x128xf32>
    %272 = arith.mulf %270, %271 : vector<16x128xf32>
    %273 = vector.broadcast %258 : vector<1x128xf32> to vector<16x128xf32>
    %274 = arith.addf %272, %273 : vector<16x128xf32>
    %c0_185 = arith.constant 0 : index
    %c0_186 = arith.constant 0 : index
    %275 = vector.load %arg28[%c0_185, %c0_186] : memref<16x128xf32, #tpu.memory_space<vmem>>, vector<16x128xf32>
    tpu.vector_store %arg28[%c0_185, %c0_186], %274 {strides = array<i32>} : memref<16x128xf32, #tpu.memory_space<vmem>>, vector<16x128xf32>,
    return
  }
}

</mosaic_0001>

<bundles_post_ra>
// kernel: gnn_node_virtualnode_forward.1
= control target key start
LH: loop header
LB: loop body
LE: loop exit
PB: predicated region body
PF: predicated region fallthrough
CT: control target
= control target key end

     0   :  { %s4801_s0 = inlined_call_operand.vmem [shape: f32[3], index: 0, kind: input, shape index: {}]   ;;  %s4802_s1 = inlined_call_operand.vmem [shape: s32[16,1], index: 1, kind: input, shape index: {}]   ;;  %s4803_s2 = inlined_call_operand.vmem [shape: s32[16,1], index: 2, kind: input, shape index: {}]   ;;  %s4804_s3 = inlined_call_operand.vmem [shape: s32[32,1], index: 3, kind: input, shape index: {}]   ;;  %s4805_s4 = inlined_call_operand.vmem [shape: s32[32,1], index: 4, kind: input, shape index: {}]   ;;  %s4806_s5 = inlined_call_operand.vmem [shape: s32[32,1], index: 5, kind: input, shape index: {}]   ;;  %s4807_s6 = inlined_call_operand.vmem [shape: s32[1,32], index: 6, kind: input, shape index: {}]   ;;  %s4808_s7 = inlined_call_operand.vmem [shape: s32[16,1], index: 7, kind: input, shape index: {}]   ;;  %s4809_s8 = inlined_call_operand.vmem [shape: s32[1,16], index: 8, kind: input, shape index: {}]   ;;  %s4810_s9 = inlined_call_operand.vmem [shape: f32[16,128], index: 9, kind: input, shape index: {}]   ;;  %s4811_s10 = inlined_call_operand.vmem [shape: f32[3,8,128], index: 10, kind: input, shape index: {}]   ;;  %s4812_s11 = inlined_call_operand.vmem [shape: f32[8,128], index: 11, kind: input, shape index: {}]   ;;  %s4813_s12 = inlined_call_operand.vmem [shape: f32[3,128,128], index: 12, kind: input, shape index: {}]   ;;  %s4814_s13 = inlined_call_operand.vmem [shape: f32[3,1,128], index: 13, kind: input, shape index: {}]   ;;  %s4815_s14 = inlined_call_operand.vmem [shape: f32[3,1,128], index: 14, kind: input, shape index: {}]   ;;  %s4816_s15 = inlined_call_operand.vmem [shape: f32[3,1,128], index: 15, kind: input, shape index: {}]   ;;  %s4817_s16 = inlined_call_operand.vmem [shape: f32[3,128,128], index: 16, kind: input, shape index: {}]   ;;  %s4818_s17 = inlined_call_operand.vmem [shape: f32[3,1,128], index: 17, kind: input, shape index: {}]   ;;  %s4819_s18 = inlined_call_operand.vmem [shape: f32[3,1,128], index: 18, kind: input, shape index: {}]   ;;  %s4820_s19 = inlined_call_operand.vmem [shape: f32[3,1,128], index: 19, kind: input, shape index: {}]   ;;  %s4821_s20 = inlined_call_operand.vmem [shape: f32[2,128,128], index: 20, kind: input, shape index: {}]   ;;  %s4822_s21 = inlined_call_operand.vmem [shape: f32[2,1,128], index: 21, kind: input, shape index: {}]   ;;  %s4823_s22 = inlined_call_operand.vmem [shape: f32[2,1,128], index: 22, kind: input, shape index: {}]   ;;  %s4824_s23 = inlined_call_operand.vmem [shape: f32[2,1,128], index: 23, kind: input, shape index: {}]   ;;  %s4825_s24 = inlined_call_operand.vmem [shape: f32[2,128,128], index: 24, kind: input, shape index: {}]   ;;  %s4826_s25 = inlined_call_operand.vmem [shape: f32[2,1,128], index: 25, kind: input, shape index: {}]   ;;  %s4827_s26 = inlined_call_operand.vmem [shape: f32[2,1,128], index: 26, kind: input, shape index: {}]   ;;  %s4828_s27 = inlined_call_operand.vmem [shape: f32[2,1,128], index: 27, kind: input, shape index: {}]   ;;  %s4829_s28 = inlined_call_operand.hbm [shape: f32[16,128], index: 28, kind: output, shape index: {}]  }
   0x1   :  { %4839 = sst [smem:[#allocation8_spill]] %s4801_s0 }
   0x2   :  { %4840 = sst [smem:[#allocation9_spill]] %s4802_s1 }
   0x3   :  { %4841 = sst [smem:[#allocation10_spill]] %s4803_s2 }
   0x4   :  { %4842 = sst [smem:[#allocation11_spill]] %s4804_s3 }
   0x5   :  { %4843 = sst [smem:[#allocation12_spill]] %s4805_s4 }
   0x6   :  { %4844 = sst [smem:[#allocation13_spill]] %s4806_s5 }
   0x7   :  { %4845 = sst [smem:[#allocation14_spill]] %s4807_s6 }
   0x8   :  { %4846 = sst [smem:[#allocation15_spill]] %s4808_s7 }
   0x9   :  { %4847 = sst [smem:[#allocation16_spill]] %s4809_s8 }
   0xa   :  { %4848 = sst [smem:[#allocation17_spill]] %s4810_s9 }
   0xb   :  { %4849 = sst [smem:[#allocation18_spill]] %s4811_s10 }
   0xc   :  { %4850 = sst [smem:[#allocation19_spill]] %s4812_s11 }
   0xd   :  { %4851 = sst [smem:[#allocation20_spill]] %s4813_s12 }
   0xe   :  { %33 = vsyncpa [#allocation4], 0 }
   0xf   :  { %34 = vsyncpa [#allocation3], 0  ;;  %s4852_s9 = sld [smem:[#allocation8_spill]] }
  0x15   :  { %s41_s30 = sshll.u32 %s4852_s9, 4  ;;  %s42_s30 = int_to_ptr.vmem [resolvable:$true] %s41_s30 }
  0x16   :  { %s3699_s3 = scalar_lea.vmem %s42_s30, 16  ;;  %p3704_p1 = scmp.lt.s32.totalorder %s42_s30, %s42_s30 }
  0x17   :  { %p3700_p0 = scmp.ne.s32.totalorder %s42_s30, %s3699_s3  ;;  %p3705_p2 = scmp.lt.s32.totalorder %s3699_s3, %s3699_s3 }
  0x19   :  { %p3706_p3 = por %p3705_p2, %p3704_p1 }
  0x1b   :  { %p3707_p4 = pnand %p3706_p3, %p3700_p0 }
  0x1d   :  { %3710 = shalt.err (!%p3707_p4)
}
  0x1e   :  { %s3737_s6 = smov [#allocation2]  }
  0x1f   :  { %44 = dma.vmem_to_smem %s42_s30, 16, %s3737_s6, [#allocation4]  }
  0x20   :  { %3733 = dma.done.wait [#allocation4], 16  }
  0x21   :  { %3734 = vsyncadd [#allocation4], 4294967280 }
  0x22   :  { %102 = sfence }
  0x23   :  { %s4853_s11 = sld [smem:[#allocation15_spill]]  ;;  %s4854_s7 = sld [smem:[#allocation9_spill]]  ;;  %v3738_v2 = vmov 0   ;;  %v3739_v24 = vmov 0.0   ;;  %v106_v25 = vlaneseq  ;;  %vm266_vm0 = vcmask 64512  }
  0x24   :  { %3698 = vset.pattern.permute.xlu1 %v3738_v2  ;;  %3697 = vset.pattern.permute.xlu0 %v3738_v2  ;;  %s4855_s5 = sld [smem:[#allocation10_spill]]  ;;  %s4856_s3 = sld [smem:[#allocation19_spill]]  ;;  %vm348_vm5 = vcmask 130048  }
  0x25   :  { %s4857_s12 = sld [smem:[#allocation17_spill]]  ;;  %s4858_s9 = sld [smem:[#allocation13_spill]]  ;;  %v3965_v26 = vand.u32 127, %v106_v25 }
  0x26   :  { %s4859_s2 = sld [smem:[#allocation11_spill]]  ;;  %s4860_s4 = sld [smem:[#allocation12_spill]] }
  0x27   :  { %s635_s0 = sld [smem:[#allocation2]]  ;;  %s3742_s1 = smov [#allocation5]  }
  0x29   :  { %v184_v0 = vld [vmem:[%s4853_s11] sm:$0xff]  ;;  %v185_v3 = vld [vmem:[%s4853_s11 + $0x8] sm:$0xff]  ;;  %s4861_s11 = sld [smem:[#allocation18_spill]] }
  0x2a   :  { %v104_v1 = vld [vmem:[%s4854_s7] sm:$0xff]  ;;  %187 = vperm.xlu0 %3697, %v184_v0   ;;  %v105_v6 = vld [vmem:[%s4854_s7 + $0x8] sm:$0xff]  ;;  %s4864_s7 = sld [smem:[#allocation16_spill]] }
  0x2b   :  { %109 = vperm.xlu1 %3698, %v104_v1   ;;  %v120_v4 = vld [vmem:[%s4855_s5] sm:$0xff]  ;;  %v121_v7 = vld [vmem:[%s4855_s5 + $0x8] sm:$0xff]  ;;  %v141_v13 = vld [vmem:[%s4858_s9 + $0x10] sm:$0xff]  ;;  %s4862_s5 = sld [smem:[#allocation20_spill]] }
  0x2c   :  { %v3908_v5 = vld [vmem:[%s4856_s3] sm:$0xff]  ;;  %v137_v9 = vld [vmem:[%s4857_s12 + $0x8] sm:$0xff]  ;;  %v142_v14 = vld [vmem:[%s4858_s9 + $0x18] sm:$0xff]  ;;  %s4863_s3 = sld [smem:[#allocation14_spill]] }
  0x2d   :  { %2937 = vmatprep.subr.mxu0 %v3908_v5  ;;  %v136_v8 = vld [vmem:[%s4857_s12] sm:$0xff]  ;;  %v140_v12 = vld [vmem:[%s4858_s9 + $0x8] sm:$0xff]  ;;  %v208_v19 = vld [vmem:[%s4859_s2 + $0x10] sm:$0xff]  ;;  %s2564_s12 = sld [smem:[#allocation2 + $0x1]] }
  0x2e   :  { %190 = vperm.xlu0 %3697, %v185_v3   ;;  %2938 = vmatpush3.msra.mxu0 %v3908_v5  ;;  %v3389_v10 = vpack.c.bf16 %v137_v9, %v136_v8  ;;  %v139_v11 = vld [vmem:[%s4858_s9] sm:$0xff]  ;;  %v207_v17 = vld [vmem:[%s4859_s2 + $0x8] sm:$0xff]  ;;  %v236_v20 = vld [vmem:[%s4860_s4 + $0x10] sm:$0xff] }
  0x2f   :  { %123 = vperm.xlu1 %3698, %v120_v4   ;;  %v206_v15 = vld [vmem:[%s4859_s2] sm:$0xff]  ;;  %v235_v18 = vld [vmem:[%s4860_s4 + $0x8] sm:$0xff]  ;;  %v209_v22 = vld [vmem:[%s4859_s2 + $0x18] sm:$0xff] }
  0x30   :  { %3390 = vmatprep.subr.bf16.mxu0 %v3389_v10  ;;  %v234_v16 = vld [vmem:[%s4860_s4] sm:$0xff]  ;;  %v237_v23 = vld [vmem:[%s4860_s4 + $0x18] sm:$0xff] }
  0x31   :  { %v430_v21 = vld [vmem:[%s4861_s11] sm:$0xff] }
  0x32   :  { %112 = vperm.xlu0 %3697, %v105_v6   ;;  %2949 = vmatprep.subr.mxu1 %v430_v21 }
  0x33   :  { %126 = vperm.xlu1 %3698, %v121_v7   ;;  %2950 = vmatpush3.msra.mxu1 %v430_v21  ;;  %v645_v21 = vld [vmem:[%s4862_s5 + $0x20] sm:$0xff] }
  0x34   :  { %2963 = vmatprep.subr.bf16.mxu1 %v3739_v24 }
  0x36   :  { %144 = vperm.xlu0 %3697, %v139_v11  }
  0x37   :  { %147 = vperm.xlu1 %3698, %v140_v12  }
  0x3a   :  { %150 = vperm.xlu0 %3697, %v141_v13  }
  0x3b   :  { %153 = vperm.xlu1 %3698, %v142_v14  }
  0x3e   :  { %211 = vperm.xlu0 %3697, %v206_v15   ;;  %v641_v15 = vld [vmem:[%s4862_s5] sm:$0xff] }
  0x3f   :  { %239 = vperm.xlu1 %3698, %v234_v16   ;;  %v642_v16 = vld [vmem:[%s4862_s5 + $0x8] sm:$0xff] }
  0x42   :  { %214 = vperm.xlu0 %3697, %v207_v17   ;;  %v643_v17 = vld [vmem:[%s4862_s5 + $0x10] sm:$0xff] }
  0x43   :  { %242 = vperm.xlu1 %3698, %v235_v18   ;;  %v3393_v18 = vpack.c.bf16 %v642_v16, %v641_v15  ;;  %v665_v15 = vld [vmem:[%s4817_s16 + $0x28] sm:$0xff] }
  0x46   :  { %217 = vperm.xlu0 %3697, %v208_v19   ;;  %v644_v19 = vld [vmem:[%s4862_s5 + $0x18] sm:$0xff] }
  0x47   :  { %245 = vperm.xlu1 %3698, %v236_v20   ;;  %v3397_v20 = vpack.c.bf16 %v644_v19, %v643_v17  ;;  %v666_v17 = vld [vmem:[%s4817_s16 + $0x30] sm:$0xff] }
  0x4a   :  { %220 = vperm.xlu0 %3697, %v209_v22   ;;  %v646_v22 = vld [vmem:[%s4862_s5 + $0x28] sm:$0xff] }
  0x4b   :  { %248 = vperm.xlu1 %3698, %v237_v23   ;;  %v3401_v23 = vpack.c.bf16 %v646_v22, %v645_v21  ;;  %v669_v21 = vld [vmem:[%s4817_s16 + $0x48] sm:$0xff] }
  0xa9   :  { %v188_v27 = vpop.permute.xlu0 %187 }
  0xaa   :  { %v110_v28 = vpop.permute.xlu1 %109  ;;  %vm192_vm1 = vcmp.eq.s32.totalorder %v3965_v26, %v188_v27  ;;  %v648_v27 = vld [vmem:[%s4862_s5 + $0x38] sm:$0xff] }
  0xab   :  { %v3969_v29 = vsel %vm192_vm1, 1.0, %v3739_v24  ;;  %vm114_vm2 = vcmp.eq.s32.totalorder %v3965_v26, %v110_v28 }
  0xac   :  { %2939 = vmatprep.mubr.msk.f32.mxu0 %vm266_vm0, %v3969_v29  ;;  %v2507_v32 = vsel %vm114_vm2, 1.0, %v3739_v24 }
  0xad   :  { %v191_v30 = vpop.permute.xlu0 %190 }
  0xae   :  { %v124_v31 = vpop.permute.xlu1 %123  ;;  %vm193_vm3 = vcmp.eq.s32.totalorder %v3965_v26, %v191_v30  ;;  %v649_v30 = vld [vmem:[%s4862_s5 + $0x40] sm:$0xff] }
  0xaf   :  { %vm128_vm4 = vcmp.eq.s32.totalorder %v3965_v26, %v124_v31  ;;  %v3978_v33 = vsel %vm193_vm3, 1.0, %v3739_v24  ;;  %v650_v31 = vld [vmem:[%s4862_s5 + $0x48] sm:$0xff] }
  0xb0   :  { %v2509_v34 = vsel %vm128_vm4, 1.0, %v3739_v24  ;;  %2940 = vmatmul.mubr.msk.f32.vlgmr.msra.gmra.mrb[0].mxu0 %vm266_vm0, %v3978_v33 }
  0xb1   :  { %v134_v35 = vadd.f32 %v2509_v34, %v2507_v32  ;;  %v113_v36 = vpop.permute.xlu0 %112  ;;  %3392 = vmatpush3.bf16.msra.mxu0 %v3389_v10  ;;  %v3409_v32 = vpack.c.bf16 %v650_v31, %v649_v30  ;;  %v651_v34 = vld [vmem:[%s4862_s5 + $0x50] sm:$0xff] }
  0xb2   :  { %v127_v37 = vpop.permute.xlu1 %126  ;;  %vm115_vm6 = vcmp.eq.s32.totalorder %v3965_v26, %v113_v36 }
  0xb3   :  { %vm129_vm7 = vcmp.eq.s32.totalorder %v3965_v26, %v127_v37  ;;  %2946 = vmatprep.mubr.msk.f32.mxu0 %vm348_vm5, %v134_v35  ;;  %v2508_v38 = vsel %vm115_vm6, 1.0, %v3739_v24  ;;  %vm3740_vm6 = vmmov 0   ;;  %v652_v35 = vld [vmem:[%s4862_s5 + $0x58] sm:$0xff]  ;;  %v653_v37 = vld [vmem:[%s4862_s5 + $0x60] sm:$0xff] }
  0xb4   :  { %v2510_v39 = vsel %vm129_vm7, 1.0, %v3739_v24  ;;  %v3413_v36 = vpack.c.bf16 %v652_v35, %v651_v34 }
  0xb5   :  { %v145_v40 = vpop.permute.xlu0 %144  ;;  %v135_v42 = vadd.f32 %v2510_v39, %v2508_v38  ;;  %v654_v38 = vld [vmem:[%s4862_s5 + $0x68] sm:$0xff] }
  0xb6   :  { %v148_v41 = vpop.permute.xlu1 %147  ;;  %vm155_vm8 = vcmp.eq.s32.totalorder %v3965_v26, %v145_v40  ;;  %v3417_v39 = vpack.c.bf16 %v654_v38, %v653_v37  ;;  %v4092_v40 = vshrl.u32 %v106_v25, 7 }
  0xb7   :  { %vm156_vm9 = vcmp.eq.s32.totalorder %v3965_v26, %v148_v41  ;;  %v2511_v43 = vsel %vm155_vm8, 1.0, %v3739_v24 }
  0xb8   :  { %v2512_v44 = vsel %vm156_vm9, 1.0, %v3739_v24  ;;  %2947 = vmatmul.mubr.msk.f32.vlgmr.msra.gmra.mrb[0].mxu0 %vm348_vm5, %v135_v42  ;;  %vm590_vm9 = vcmask 261120  }
  0xb9   :  { %v3992_v45 = vpack.c.bf16 %v2512_v44, %v2511_v43  ;;  %v151_v46 = vpop.permute.xlu0 %150 }
  0xba   :  { %v154_v47 = vpop.permute.xlu1 %153  ;;  %vm157_vm10 = vcmp.eq.s32.totalorder %v3965_v26, %v151_v46 }
  0xbb   :  { %vm158_vm11 = vcmp.eq.s32.totalorder %v3965_v26, %v154_v47  ;;  %2959 = vmatprep.mubr.msk.bf16.mxu0 %vm348_vm5, %v3992_v45  ;;  %v2513_v48 = vsel %vm157_vm10, 1.0, %v3739_v24 }
  0xbc   :  { %v2514_v49 = vsel %vm158_vm11, 1.0, %v3739_v24 }
  0xbd   :  { %v4001_v50 = vpack.c.bf16 %v2514_v49, %v2513_v48  ;;  %v212_v51 = vpop.permute.xlu0 %211  ;;  %v172_v49 = vadd.s32 8, %v4092_v40 }
  0xbe   :  { %v240_v52 = vpop.permute.xlu1 %239  ;;  %vm222_vm12 = vcmp.eq.s32.totalorder %v3965_v26, %v212_v51 }
  0xbf   :  { %vm250_vm13 = vcmp.eq.s32.totalorder %v3965_v26, %v240_v52  ;;  %v2522_v53 = vsel %vm222_vm12, 1.0, %v3739_v24  ;;  %v2515_v52 = vld [vmem:[%s4863_s3] ss:$0 sm:$0xff] }
  0xc0   :  { %v2526_v54 = vsel %vm250_vm13, 1.0, %v3739_v24  ;;  %vm177_vm7 = vcmp.eq.s32.totalorder %v4092_v40, %v2515_v52  ;;  %vm178_vm8 = vcmp.eq.s32.totalorder %v172_v49, %v2515_v52  ;;  %v2543_v52 = vld [vmem:[%s4816_s15] ss:$0 sm:$0xff] }
  0xc1   :  { %v4007_v55 = vadd.f32 %v2526_v54, %v2522_v53  ;;  %v215_v56 = vpop.permute.xlu0 %214 }
  0xc2   :  { %v243_v57 = vpop.permute.xlu1 %242  ;;  %vm223_vm14 = vcmp.eq.s32.totalorder %v3965_v26, %v215_v56 }
  0xc3   :  { %vm251_vm15 = vcmp.eq.s32.totalorder %v3965_v26, %v243_v57  ;;  %2951 = vmatprep.mubr.msk.f32.mxu1 %vm266_vm0, %v4007_v55  ;;  %v2523_v58 = vsel %vm223_vm14, 1.0, %v3739_v24 }
  0xc4   :  { %v2527_v59 = vsel %vm251_vm15, 1.0, %v3739_v24 }
  0xc5   :  { %v4015_v60 = vadd.f32 %v2527_v59, %v2523_v58  ;;  %v218_v61 = vpop.permute.xlu0 %217  ;;  %v2516_v59 = vsel %vm177_vm7, 1.0, %v3739_v24 }
  0xc6   :  { %v246_v62 = vpop.permute.xlu1 %245  ;;  %vm224_vm1 = vcmp.eq.s32.totalorder %v3965_v26, %v218_v61  ;;  %v2517_v61 = vsel %vm178_vm8, 1.0, %v3739_v24 }
  0xc7   :  { %vm252_vm2 = vcmp.eq.s32.totalorder %v3965_v26, %v246_v62  ;;  %2952 = vmatmul.mubr.msk.f32.vlgmr.msra.gmra.mrb[0].mxu1 %vm266_vm0, %v4015_v60  ;;  %v2524_v63 = vsel %vm224_vm1, 1.0, %v3739_v24  ;;  %v4102_v62 = vpack.c.bf16 %v2517_v61, %v2516_v59 }
  0xc8   :  { %v2528_v0 = vsel %vm252_vm2, 1.0, %v3739_v24 }
  0xc9   :  { %v4023_v1 = vadd.f32 %v2528_v0, %v2524_v63  ;;  %v221_v2 = vpop.permute.xlu0 %220  ;;  %v655_v63 = vld [vmem:[%s4862_s5 + $0x70] sm:$0xff]  ;;  %v656_v0 = vld [vmem:[%s4862_s5 + $0x78] sm:$0xff] }
  0xca   :  { %v249_v3 = vpop.permute.xlu1 %248  ;;  %vm225_vm3 = vcmp.eq.s32.totalorder %v3965_v26, %v221_v2  ;;  %v3421_v2 = vpack.c.bf16 %v656_v0, %v655_v63  ;;  %v950_v63 = vld [vmem:[%s4821_s20] sm:$0xff]  ;;  %v951_v0 = vld [vmem:[%s4821_s20 + $0x8] sm:$0xff] }
  0xcb   :  { %vm253_vm4 = vcmp.eq.s32.totalorder %v3965_v26, %v249_v3  ;;  %2954 = vmatprep.mubr.msk.f32.mxu1 %vm266_vm0, %v4023_v1  ;;  %v2525_v4 = vsel %vm225_vm3, 1.0, %v3739_v24  ;;  %v647_v26 = vld [vmem:[%s4862_s5 + $0x30] sm:$0xff]  ;;  %v660_v3 = vld [vmem:[%s4817_s16] sm:$0xff] }
  0xcc   :  { %v2529_v6 = vsel %vm253_vm4, 1.0, %v3739_v24  ;;  %v3405_v28 = vpack.c.bf16 %v648_v27, %v647_v26  ;;  %v671_v26 = vld [vmem:[%s4817_s16 + $0x58] sm:$0xff] }
  0xcd   :  { %v4031_v7 = vadd.f32 %v2529_v6, %v2525_v4  ;;  %v661_v4 = vld [vmem:[%s4817_s16 + $0x8] sm:$0xff]  ;;  %v662_v6 = vld [vmem:[%s4817_s16 + $0x10] sm:$0xff] }
  0xcf   :  { %2955 = vmatmul.mubr.msk.f32.gmra.mrb[2].mxu1 %vm266_vm0, %v4031_v7 }
  0xd0   :  { %2967 = vmatprep.mubr.msk.bf16.mxu1 %vm3740_vm6, %v3739_v24 }
 0x18b   :  { %v4035_v8 = vpop.f32.mrb[0].mxu0 }
 0x18c   :  { %v4037_v9 = vpop.f32.mrb[1].mxu0 }
 0x18d   :  { %v4041_v10 = vpack.c.bf16 %v4035_v8, %v4037_v9 }
 0x18f   :  { %2957 = vmatprep.subr.bf16.mxu0 %v4041_v10 }
 0x190   :  { %2958 = vmatpush3.bf16.msra.mxu0 %v4041_v10 }
 0x191   :  { %3394 = vmatprep.subr.bf16.mxu0 %v3393_v18 }
 0x193   :  { %2960 = vmatmul.mubr.msk.bf16.vlgmr.msra.gmra.mrb[4].mxu0 %vm348_vm5, %v4001_v50 }
 0x194   :  { %3396 = vmatpush3.bf16.msra.mxu0 %v3393_v18  ;;  %v667_v18 = vld [vmem:[%s4817_s16 + $0x38] sm:$0xff] }
 0x195   :  { %3398 = vmatprep.subr.bf16.mxu0 %v3397_v20  ;;  %v3437_v19 = vpack.c.bf16 %v667_v18, %v666_v17  ;;  %v959_v17 = vld [vmem:[%s4821_s20 + $0x48] sm:$0xff] }
 0x198   :  { %3400 = vmatpush3.bf16.msra.mxu0 %v3397_v20  ;;  %v668_v20 = vld [vmem:[%s4817_s16 + $0x40] sm:$0xff] }
 0x199   :  { %3402 = vmatprep.subr.bf16.mxu0 %v3401_v23  ;;  %v3441_v22 = vpack.c.bf16 %v669_v21, %v668_v20  ;;  %v961_v20 = vld [vmem:[%s4821_s20 + $0x58] sm:$0xff] }
 0x19a   :  { %v2953_v11 = vpop.f32.mrb[0].mxu1 }
 0x19b   :  { %v509_v12 = vpop.f32.mrb[1].mxu1 }
 0x19c   :  { %3404 = vmatpush3.bf16.msra.mxu0 %v3401_v23  ;;  %v670_v23 = vld [vmem:[%s4817_s16 + $0x50] sm:$0xff] }
 0x19d   :  { %3406 = vmatprep.subr.bf16.mxu0 %v3405_v28  ;;  %v3445_v27 = vpack.c.bf16 %v671_v26, %v670_v23  ;;  %v963_v23 = vld [vmem:[%s4821_s20 + $0x68] sm:$0xff] }
 0x1a0   :  { %3408 = vmatpush3.bf16.msra.mxu0 %v3405_v28  ;;  %v636_v28 = vstv %s635_s0 }
 0x1a1   :  { %3410 = vmatprep.subr.bf16.mxu0 %v3409_v32  ;;  %v637_v30 = vmul.f32 %v636_v28, %v4037_v9  ;;  %v673_v9 = vld [vmem:[%s4817_s16 + $0x68] sm:$0xff] }
 0x1a2   :  { %v2956_v13 = vpop.f32.mrb[2].mxu1 }
 0x1a3   :  { %v519_v14 = vpop.f32.mrb[3].mxu1 }
 0x1a4   :  { %3412 = vmatpush3.bf16.msra.mxu0 %v3409_v32  ;;  %v638_v32 = vmul.f32 %v4035_v8, %v636_v28  ;;  %v674_v8 = vld [vmem:[%s4817_s16 + $0x70] sm:$0xff]  ;;  %v965_v28 = vld [vmem:[%s4821_s20 + $0x78] sm:$0xff] }
 0x1a5   :  { %3414 = vmatprep.subr.bf16.mxu0 %v3413_v36 }
 0x1a8   :  { %3416 = vmatpush3.bf16.msra.mxu0 %v3413_v36 }
 0x1a9   :  { %3418 = vmatprep.subr.bf16.mxu0 %v3417_v39 }
 0x1ac   :  { %3420 = vmatpush3.bf16.msra.mxu0 %v3417_v39  ;;  %v672_v39 = vld [vmem:[%s4817_s16 + $0x60] sm:$0xff] }
 0x1ad   :  { %3422 = vmatprep.subr.bf16.mxu0 %v3421_v2 }
 0x1b0   :  { %3424 = vmatpush3.bf16.msra.mxu0 %v3421_v2 }
 0x266   :  { %v2961_v41 = vpop.f32.mrb[4].mxu0 }
 0x267   :  { %v578_v42 = vadd.f32 %v2961_v41, %v519_v14  ;;  %v569_v43 = vpop.f32.mrb[5].mxu0  ;;  %v664_v14 = vld [vmem:[%s4817_s16 + $0x20] sm:$0xff]  ;;  %v3449_v41 = vpack.c.bf16 %v673_v9, %v672_v39  ;;  %v974_v39 = vld [vmem:[%s4825_s24 + $0x28] sm:$0xff] }
 0x268   :  { %v570_v44 = vadd.f32 %v569_v43, %v509_v12  ;;  %v2962_v46 = vpop.f32.mrb[6].mxu0  ;;  %v663_v12 = vld [vmem:[%s4817_s16 + $0x18] sm:$0xff]  ;;  %v3433_v16 = vpack.c.bf16 %v665_v15, %v664_v14 }
 0x269   :  { %v581_v47 = vadd.f32 %v2962_v46, %v2956_v13  ;;  %v572_v48 = vpop.f32.mrb[7].mxu0  ;;  %v586_v53 = vmax.f32 %v578_v42, 0.0  ;;  %v3429_v13 = vpack.c.bf16 %v663_v12, %v662_v6  ;;  %v675_v42 = vld [vmem:[%s4817_s16 + $0x78] sm:$0xff]  ;;  %v2541_v46 = vld [vmem:[%s4814_s13] ss:$0 sm:$0xff] }
 0x26a   :  { %v573_v51 = vadd.f32 %v2953_v11, %v572_v48  ;;  %v584_v56 = vmax.f32 %v570_v44, 0.0  ;;  %v3425_v11 = vpack.c.bf16 %v661_v4, %v660_v3  ;;  %v3453_v43 = vpack.c.bf16 %v675_v42, %v674_v8  ;;  %v953_v4 = vld [vmem:[%s4821_s20 + $0x18] sm:$0xff]  ;;  %v954_v6 = vld [vmem:[%s4821_s20 + $0x20] sm:$0xff] }
 0x26b   :  { %v587_v54 = vmax.f32 %v581_v47, 0.0  ;;  %v3741_v44 = vmov 0.0|0.0   ;;  %v2542_v47 = vld [vmem:[%s4815_s14] ss:$0 sm:$0xff]  ;;  %v3461_v3 = vpack.c.bf16 %v951_v0, %v950_v63  ;;  %v957_v14 = vld [vmem:[%s4821_s20 + $0x38] sm:$0xff]  ;;  %v2556_v0 = vld [vmem:[%s4861_s11 + $0x8] sm:$0xff] }
 0x26c   :  { %v585_v57 = vmax.f32 %v573_v51, 0.0  ;;  %3484 = vmatprep.subr.bf16.mxu0 %v3741_v44  ;;  %v976_v8 = vld [vmem:[%s4825_s24 + $0x38] sm:$0xff] }
 0x26d   :  { %v589_v25 = vpack.c.bf16 %v587_v54, %v586_v53 }
 0x26e   :  { %v588_v58 = vpack.c.bf16 %v585_v57, %v584_v56 }
 0x270   :  { %2964 = vmatpush3.bf16.msra.mxu1 %v588_v58  ;;  %v2520_v58 = vld [vmem:[%s4864_s7] ss:$0 sm:$0xff]  ;;  %s2495_s7 = sshll.u32 %s3742_s1, 4  ;;  %s2496_s7 = int_to_ptr.vmem [resolvable:$true] %s2495_s7 }
 0x271   :  { %2965 = vmatprep.subr.bf16.mxu1 %v3739_v24  ;;  %vm203_vm10 = vcmp.eq.s32.totalorder %v4092_v40, %v2520_v58  ;;  %v952_v40 = vld [vmem:[%s4821_s20 + $0x10] sm:$0xff]  ;;  %v982_v58 = vld [vmem:[%s4825_s24 + $0x68] sm:$0xff]  ;;  %p3716_p6 = scmp.lt.s32.totalorder %s2496_s7, %s2496_s7 }
 0x272   :  { %v4189_v2 = vsel %vm203_vm10, 1.0, %v3739_v24 }
 0x274   :  { %2966 = vmatpush3.bf16.msra.mxu1 %v589_v25 }
 0x275   :  { %3426 = vmatprep.subr.bf16.mxu1 %v3425_v11 }
 0x277   :  { %2968 = vmatmul.mubr.msk.bf16.vlgmr.msra.gmra.mrb[4].mxu1 %vm590_vm9, %v4102_v62 }
 0x278   :  { %3428 = vmatpush3.bf16.msra.mxu1 %v3425_v11  ;;  %v955_v11 = vld [vmem:[%s4821_s20 + $0x28] sm:$0xff] }
 0x279   :  { %3430 = vmatprep.subr.bf16.mxu1 %v3429_v13  ;;  %v3467_v12 = vpack.c.bf16 %v955_v11, %v954_v6  ;;  %v2550_v11 = vld [vmem:[%s4824_s23] ss:$0 sm:$0xff] }
 0x27c   :  { %3432 = vmatpush3.bf16.msra.mxu1 %v3429_v13  ;;  %v956_v13 = vld [vmem:[%s4821_s20 + $0x30] sm:$0xff] }
 0x27d   :  { %3434 = vmatprep.subr.bf16.mxu1 %v3433_v16  ;;  %v3470_v15 = vpack.c.bf16 %v957_v14, %v956_v13 }
 0x280   :  { %3436 = vmatpush3.bf16.msra.mxu1 %v3433_v16  ;;  %v958_v16 = vld [vmem:[%s4821_s20 + $0x40] sm:$0xff] }
 0x281   :  { %3438 = vmatprep.subr.bf16.mxu1 %v3437_v19  ;;  %v3473_v18 = vpack.c.bf16 %v959_v17, %v958_v16  ;;  %v2552_v16 = vld [vmem:[%s4827_s26] ss:$0 sm:$0xff] }
 0x284   :  { %3440 = vmatpush3.bf16.msra.mxu1 %v3437_v19  ;;  %v960_v19 = vld [vmem:[%s4821_s20 + $0x50] sm:$0xff] }
 0x285   :  { %3442 = vmatprep.subr.bf16.mxu1 %v3441_v22  ;;  %v3476_v21 = vpack.c.bf16 %v961_v20, %v960_v19  ;;  %v2553_v20 = vld [vmem:[%s4828_s27] ss:$0 sm:$0xff] }
 0x288   :  { %3444 = vmatpush3.bf16.msra.mxu1 %v3441_v22  ;;  %v962_v22 = vld [vmem:[%s4821_s20 + $0x60] sm:$0xff] }
 0x289   :  { %3446 = vmatprep.subr.bf16.mxu1 %v3445_v27  ;;  %v3479_v26 = vpack.c.bf16 %v963_v23, %v962_v22 }
 0x28c   :  { %3448 = vmatpush3.bf16.msra.mxu1 %v3445_v27  ;;  %v964_v27 = vld [vmem:[%s4821_s20 + $0x70] sm:$0xff] }
 0x28d   :  { %3450 = vmatprep.subr.bf16.mxu1 %v3449_v41 }
 0x290   :  { %3452 = vmatpush3.bf16.msra.mxu1 %v3449_v41  ;;  %v975_v41 = vld [vmem:[%s4825_s24 + $0x30] sm:$0xff] }
 0x291   :  { %3454 = vmatprep.subr.bf16.mxu1 %v3453_v43  ;;  %v3494_v42 = vpack.c.bf16 %v976_v8, %v975_v41 }
 0x294   :  { %3456 = vmatpush3.bf16.msra.mxu1 %v3453_v43  ;;  %v977_v43 = vld [vmem:[%s4825_s24 + $0x40] sm:$0xff] }
 0x295   :  { %3457 = vmatprep.subr.bf16.mxu1 %v3741_v44 }
 0x34a   :  { %v628_v31 = vpop.f32.mrb[4].mxu1 }
 0x34b   :  { %v639_v34 = vadd.f32 %v637_v30, %v628_v31  ;;  %v2969_v35 = vpop.f32.mrb[5].mxu1  ;;  %v3482_v30 = vpack.c.bf16 %v965_v28, %v964_v27  ;;  %v969_v31 = vld [vmem:[%s4825_s24] sm:$0xff] }
 0x34c   :  { %v631_v36 = vpop.f32.mrb[6].mxu1 }
 0x34d   :  { %v640_v37 = vadd.f32 %v638_v32, %v631_v36  ;;  %v2970_v38 = vpop.f32.mrb[7].mxu1  ;;  %3003 = vmatprep.mubr.f32.mxu0 %v639_v34  ;;  %v970_v32 = vld [vmem:[%s4825_s24 + $0x8] sm:$0xff]  ;;  %v971_v34 = vld [vmem:[%s4825_s24 + $0x10] sm:$0xff]  ;;  %v972_v36 = vld [vmem:[%s4825_s24 + $0x18] sm:$0xff] }
 0x34e   :  { %v3485_v35 = vpack.c.bf16 %v970_v32, %v969_v31  ;;  %v973_v38 = vld [vmem:[%s4825_s24 + $0x20] sm:$0xff] }
 0x34f   :  { %3004 = vmatmul.mubr.f32.vlgmr.msra.gmra.mrb[2].mxu0 %v640_v37  ;;  %v3488_v37 = vpack.c.bf16 %v972_v36, %v971_v34  ;;  %v3491_v9 = vpack.c.bf16 %v974_v39, %v973_v38  ;;  %v2544_v31 = vld [vmem:[%s4818_s17] ss:$0 sm:$0xff] }
 0x350   :  { %3115 = vmatprep.mubr.msk.f32.mxu0 %vm3740_vm6, %v3739_v24  ;;  %3486 = vmatpush3.bf16.msra.mxu0 %v3485_v35  ;;  %v2545_v34 = vld [vmem:[%s4819_s18] ss:$0 sm:$0xff] }
 0x351   :  { %3487 = vmatprep.subr.bf16.mxu0 %v3741_v44  ;;  %v2546_v38 = vld [vmem:[%s4820_s19] ss:$0 sm:$0xff] }
 0x354   :  { %3489 = vmatpush3.bf16.msra.mxu0 %v3488_v37 }
 0x355   :  { %3490 = vmatprep.subr.bf16.mxu0 %v3741_v44 }
 0x358   :  { %3492 = vmatpush3.bf16.msra.mxu0 %v3491_v9 }
 0x359   :  { %3493 = vmatprep.subr.bf16.mxu0 %v3741_v44 }
 0x35c   :  { %3495 = vmatpush3.bf16.msra.mxu0 %v3494_v42 }
 0x35d   :  { %3496 = vmatprep.subr.bf16.mxu0 %v3741_v44 }
 0x422   :  { %v3005_v48 = vpop.f32.mrb[2].mxu0 }
 0x423   :  { %v757_v49 = vadd.f32 %v3005_v48, %v2541_v46  ;;  %v751_v51 = vpop.f32.mrb[3].mxu0  ;;  %v979_v48 = vld [vmem:[%s4825_s24 + $0x50] sm:$0xff] }
 0x424   :  { %v752_v53 = vadd.f32 %v2541_v46, %v751_v51  ;;  %v978_v46 = vld [vmem:[%s4825_s24 + $0x48] sm:$0xff] }
 0x425   :  { %v767_v54 = vmul.f32 %v2542_v47, %v757_v49  ;;  %v980_v49 = vld [vmem:[%s4825_s24 + $0x58] sm:$0xff] }
 0x426   :  { %v766_v56 = vmul.f32 %v2542_v47, %v752_v53  ;;  %v3497_v47 = vpack.c.bf16 %v978_v46, %v977_v43  ;;  %v3500_v51 = vpack.c.bf16 %v980_v49, %v979_v48  ;;  %v2565_v49 = vld [vmem:[%s4862_s5 + $0x80] sm:$0xff] }
 0x427   :  { %v775_v57 = vadd.f32 %v2543_v52, %v767_v54 }
 0x428   :  { %v774_v25 = vadd.f32 %v2543_v52, %v766_v56  ;;  %3498 = vmatpush3.bf16.msra.mxu0 %v3497_v47 }
 0x429   :  { %v777_v61 = vmax.f32 %v775_v57, 0.0  ;;  %3499 = vmatprep.subr.bf16.mxu0 %v3741_v44 }
 0x42a   :  { %v776_v59 = vmax.f32 %v774_v25, 0.0  ;;  %v981_v25 = vld [vmem:[%s4825_s24 + $0x60] sm:$0xff] }
 0x42c   :  { %3038 = vmatprep.mubr.f32.mxu1 %v776_v59  ;;  %3501 = vmatpush3.bf16.msra.mxu0 %v3500_v51  ;;  %v3503_v59 = vpack.c.bf16 %v982_v58, %v981_v25  ;;  %v2566_v51 = vld [vmem:[%s4862_s5 + $0x88] sm:$0xff] }
 0x42d   :  { %3039 = vmatmul.mubr.f32.vlgmr.msra.gmra.mrb[8].mxu1 %v777_v61  ;;  %3502 = vmatprep.subr.bf16.mxu0 %v3741_v44  ;;  %v984_v61 = vld [vmem:[%s4825_s24 + $0x78] sm:$0xff]  ;;  %v2570_v25 = vld [vmem:[%s4862_s5 + $0xa8] sm:$0xff] }
 0x42e   :  { %3459 = vmatpush3.bf16.msra.mxu1 %v4041_v10  ;;  %3045 = vmatprep.mubr.msk.f32.mxu1 %vm3740_vm6, %v3739_v24  ;;  %v3464_v10 = vpack.c.bf16 %v953_v4, %v952_v40  ;;  %v2549_v40 = vld [vmem:[%s4823_s22] ss:$0 sm:$0xff] }
 0x42f   :  { %3460 = vmatprep.subr.bf16.mxu1 %v3741_v44 }
 0x430   :  { %3504 = vmatpush3.bf16.msra.mxu0 %v3503_v59  ;;  %v2571_v59 = vld [vmem:[%s4862_s5 + $0xb0] sm:$0xff] }
 0x431   :  { %3046 = vmatmul.mubr.msk.f32.vlgmr.msra.gmra.mrb[10].mxu1 %vm348_vm5, %v4189_v2  ;;  %3505 = vmatprep.subr.bf16.mxu0 %v3741_v44 }
 0x432   :  { %3462 = vmatpush3.bf16.msra.mxu1 %v3461_v3  ;;  %3080 = vmatprep.mubr.msk.f32.mxu1 %vm3740_vm6, %v3739_v24  ;;  %v2548_v3 = vld [vmem:[%s4822_s21] ss:$0 sm:$0xff] }
 0x433   :  { %3463 = vmatprep.subr.bf16.mxu1 %v3741_v44 }
 0x436   :  { %3465 = vmatpush3.bf16.msra.mxu1 %v3464_v10 }
 0x437   :  { %3466 = vmatprep.subr.bf16.mxu1 %v3741_v44 }
 0x43a   :  { %3468 = vmatpush3.bf16.msra.mxu1 %v3467_v12 }
 0x43b   :  { %3469 = vmatprep.subr.bf16.mxu1 %v3741_v44 }
 0x43e   :  { %3471 = vmatpush3.bf16.msra.mxu1 %v3470_v15  ;;  %v2551_v15 = vld [vmem:[%s4826_s25] ss:$0 sm:$0xff] }
 0x43f   :  { %3472 = vmatprep.subr.bf16.mxu1 %v3741_v44 }
 0x442   :  { %3474 = vmatpush3.bf16.msra.mxu1 %v3473_v18 }
 0x443   :  { %3475 = vmatprep.subr.bf16.mxu1 %v3741_v44 }
 0x446   :  { %3477 = vmatpush3.bf16.msra.mxu1 %v3476_v21 }
 0x447   :  { %3478 = vmatprep.subr.bf16.mxu1 %v3741_v44 }
 0x44a   :  { %3480 = vmatpush3.bf16.msra.mxu1 %v3479_v26 }
 0x44b   :  { %3481 = vmatprep.subr.bf16.mxu1 %v3741_v44 }
 0x44e   :  { %3483 = vmatpush3.bf16.msra.mxu1 %v3482_v30 }
 0x500   :  { %v3040_v52 = vpop.f32.mrb[8].mxu1 }
 0x501   :  { %v850_v53 = vpop.f32.mrb[9].mxu1  ;;  %v856_v32 = vadd.f32 %v3040_v52, %v2544_v31  ;;  %v2567_v52 = vld [vmem:[%s4862_s5 + $0x90] sm:$0xff] }
 0x502   :  { %v851_v35 = vadd.f32 %v2544_v31, %v850_v53  ;;  %v3508_v53 = vpack.c.bf16 %v2566_v51, %v2565_v49  ;;  %v2591_v49 = vld [vmem:[%s4817_s16 + $0xb8] sm:$0xff] }
 0x503   :  { %v866_v36 = vmul.f32 %v2545_v34, %v856_v32 }
 0x504   :  { %v946_v54 = vpop.f32.mrb[10].mxu1  ;;  %v865_v37 = vmul.f32 %v2545_v34, %v851_v35 }
 0x505   :  { %v947_v56 = vadd.f32 %v946_v54, %v3908_v5  ;;  %v3047_v57 = vpop.f32.mrb[11].mxu1  ;;  %v983_v5 = vld [vmem:[%s4825_s24 + $0x70] sm:$0xff]  ;;  %v874_v39 = vadd.f32 %v2546_v38, %v866_v36  ;;  %v2568_v54 = vld [vmem:[%s4862_s5 + $0x98] sm:$0xff]  ;;  %v2585_v36 = vld [vmem:[%s4817_s16 + $0x88] sm:$0xff] }
 0x506   :  { %v3506_v63 = vpack.c.bf16 %v984_v61, %v983_v5  ;;  %v873_v9 = vadd.f32 %v2546_v38, %v865_v37  ;;  %v2569_v57 = vld [vmem:[%s4862_s5 + $0xa0] sm:$0xff]  ;;  %v2572_v5 = vld [vmem:[%s4862_s5 + $0xb8] sm:$0xff]  ;;  %v2586_v38 = vld [vmem:[%s4817_s16 + $0x90] sm:$0xff] }
 0x507   :  { %3081 = vmatmul.mubr.f32.vlgmr.msra.gmra.mrb[12].mxu1 %v947_v56  ;;  %v876_v41 = vmax.f32 %v874_v39, 0.0  ;;  %v3512_v56 = vpack.c.bf16 %v2568_v54, %v2567_v52  ;;  %v3516_v58 = vpack.c.bf16 %v2570_v25, %v2569_v57  ;;  %v3520_v61 = vpack.c.bf16 %v2572_v5, %v2571_v59  ;;  %v2587_v39 = vld [vmem:[%s4817_s16 + $0x98] sm:$0xff]  ;;  %v2592_v52 = vld [vmem:[%s4817_s16 + $0xc0] sm:$0xff] }
 0x508   :  { %3120 = vmatprep.mubr.msk.f32.mxu1 %vm266_vm0, %v3969_v29  ;;  %3507 = vmatpush3.bf16.msra.mxu0 %v3506_v63  ;;  %v875_v42 = vmax.f32 %v873_v9, 0.0  ;;  %v2573_v63 = vld [vmem:[%s4862_s5 + $0xc0] sm:$0xff]  ;;  %v3544_v9 = vpack.c.bf16 %v2587_v39, %v2586_v38  ;;  %v2595_v57 = vld [vmem:[%s4817_s16 + $0xd8] sm:$0xff] }
 0x509   :  { %3123 = vmatprep.subr.mxu0 %v2556_v0  ;;  %v2599_v38 = vld [vmem:[%s4817_s16 + $0xf8] sm:$0xff] }
 0x5da   :  { %v1060_v4 = vpop.f32.mrb[12].mxu1 }
 0x5db   :  { %v1061_v10 = vadd.f32 %v2548_v3, %v1060_v4  ;;  %v3082_v6 = vpop.f32.mrb[13].mxu1  ;;  %v2576_v4 = vld [vmem:[%s4862_s5 + $0xd8] sm:$0xff] }
 0x5dc   :  { %v2577_v6 = vld [vmem:[%s4862_s5 + $0xe0] sm:$0xff] }
 0x5dd   :  { %v1070_v12 = vmul.f32 %v2549_v40, %v1061_v10  ;;  %v2575_v40 = vld [vmem:[%s4862_s5 + $0xd0] sm:$0xff] }
 0x5de   :  { %v3528_v10 = vpack.c.bf16 %v2576_v4, %v2575_v40 }
 0x5df   :  { %v1077_v13 = vadd.f32 %v2550_v11, %v1070_v12  ;;  %v2578_v11 = vld [vmem:[%s4862_s5 + $0xe8] sm:$0xff] }
 0x5e0   :  { %v3532_v12 = vpack.c.bf16 %v2578_v11, %v2577_v6  ;;  %v2611_v6 = vld [vmem:[%s4821_s20 + $0x88] sm:$0xff]  ;;  %v2613_v11 = vld [vmem:[%s4821_s20 + $0x98] sm:$0xff] }
 0x5e1   :  { %v1078_v14 = vmax.f32 %v1077_v13, 0.0 }
 0x5e3   :  { %3116 = vmatmul.mubr.f32.vlgmr.msra.gmra.mrb[8].mxu0 %v1078_v14 }
 0x5e4   :  { %3125 = vmatprep.mubr.msk.f32.mxu0 %vm266_vm0, %v4007_v55  ;;  %3124 = vmatpush3.msra.mxu0 %v2556_v0  ;;  %v2574_v0 = vld [vmem:[%s4862_s5 + $0xc8] sm:$0xff] }
 0x5e5   :  { %3137 = vmatprep.subr.bf16.mxu0 %v3739_v24  ;;  %v3524_v3 = vpack.c.bf16 %v2574_v0, %v2573_v63 }
 0x5e7   :  { %3126 = vmatmul.mubr.msk.f32.vlgmr.msra.gmra.mrb[10].mxu0 %vm266_vm0, %v4015_v60 }
 0x5e8   :  { %3128 = vmatprep.mubr.msk.f32.mxu0 %vm266_vm0, %v4023_v1 }
 0x5eb   :  { %3129 = vmatmul.mubr.msk.f32.gmra.mrb[12].mxu0 %vm266_vm0, %v4031_v7 }
 0x5ec   :  { %3141 = vmatprep.mubr.msk.bf16.mxu0 %vm3740_vm6, %v3739_v24 }
 0x6b6   :  { %v1151_v17 = vpop.f32.mrb[8].mxu0 }
 0x6b7   :  { %v1152_v18 = vadd.f32 %v2551_v15, %v1151_v17  ;;  %v3117_v19 = vpop.f32.mrb[9].mxu0 }
 0x6b9   :  { %v1161_v21 = vmul.f32 %v2552_v16, %v1152_v18 }
 0x6ba   :  { %v4335_v22 = vpop.f32.mrb[10].mxu0 }
 0x6bb   :  { %v4337_v23 = vpop.f32.mrb[11].mxu0  ;;  %v1168_v26 = vadd.f32 %v2553_v20, %v1161_v21 }
 0x6bd   :  { %v4339_v27 = vmax.f32 %v1168_v26, 0.0 }
 0x6be   :  { %v4341_v28 = vpop.f32.mrb[12].mxu0 }
 0x6bf   :  { %3118 = vmatprep.subr.mxu1 %v4339_v27  ;;  %v1325_v30 = vpop.f32.mrb[13].mxu0 }
 0x6c0   :  { %3119 = vmatpush3.msra.mxu1 %v4339_v27 }
 0x6c1   :  { %3121 = vmatmul.mubr.msk.f32.vlgmr.msra.gmra.mrb[14].mxu1 %vm266_vm0, %v3978_v33 }
 0x6c2   :  { %3133 = vmatprep.mubr.msk.bf16.mxu1 %vm348_vm5, %v3992_v45 }
 0x794   :  { %v3122_v8 = vpop.f32.mrb[14].mxu1 }
 0x795   :  { %v4358_v43 = vadd.f32 %v3122_v8, %v876_v41  ;;  %v1236_v46 = vpop.f32.mrb[15].mxu1  ;;  %v2588_v41 = vld [vmem:[%s4817_s16 + $0xa0] sm:$0xff]  ;;  %v2589_v8 = vld [vmem:[%s4817_s16 + $0xa8] sm:$0xff] }
 0x796   :  { %v4360_v47 = vadd.f32 %v1236_v46, %v875_v42  ;;  %v3548_v42 = vpack.c.bf16 %v2589_v8, %v2588_v41  ;;  %v2590_v46 = vld [vmem:[%s4817_s16 + $0xb0] sm:$0xff]  ;;  %v2604_v41 = vld [vmem:[%s4815_s14 + $0x1] ss:$0 sm:$0xff] }
 0x797   :  { %v3552_v51 = vpack.c.bf16 %v2591_v49, %v2590_v46  ;;  %v2605_v49 = vld [vmem:[%s4816_s15 + $0x1] ss:$0 sm:$0xff] }
 0x798   :  { %v4364_v48 = vpack.c.bf16 %v4358_v43, %v4360_v47 }
 0x79a   :  { %3131 = vmatprep.subr.bf16.mxu1 %v4364_v48 }
 0x79b   :  { %3132 = vmatpush3.bf16.msra.mxu1 %v4364_v48 }
 0x79c   :  { %3509 = vmatprep.subr.bf16.mxu1 %v3508_v53 }
 0x79e   :  { %3134 = vmatmul.mubr.msk.bf16.vlgmr.msra.gmra.mrb[16].mxu1 %vm348_vm5, %v4001_v50 }
 0x79f   :  { %3511 = vmatpush3.bf16.msra.mxu1 %v3508_v53  ;;  %v2593_v53 = vld [vmem:[%s4817_s16 + $0xc8] sm:$0xff] }
 0x7a0   :  { %3513 = vmatprep.subr.bf16.mxu1 %v3512_v56  ;;  %v3556_v54 = vpack.c.bf16 %v2593_v53, %v2592_v52 }
 0x7a3   :  { %3515 = vmatpush3.bf16.msra.mxu1 %v3512_v56  ;;  %v2594_v56 = vld [vmem:[%s4817_s16 + $0xd0] sm:$0xff] }
 0x7a4   :  { %3517 = vmatprep.subr.bf16.mxu1 %v3516_v58  ;;  %v3560_v25 = vpack.c.bf16 %v2595_v57, %v2594_v56 }
 0x7a7   :  { %3519 = vmatpush3.bf16.msra.mxu1 %v3516_v58  ;;  %v1432_v58 = vstv %s2564_s12 }
 0x7a8   :  { %3521 = vmatprep.subr.bf16.mxu1 %v3520_v61  ;;  %v1433_v59 = vmul.f32 %v1432_v58, %v4360_v47  ;;  %v1434_v0 = vmul.f32 %v1432_v58, %v4358_v43  ;;  %v2612_v43 = vld [vmem:[%s4821_s20 + $0x90] sm:$0xff]  ;;  %v2629_v58 = vld [vmem:[%s4825_s24 + $0x80] sm:$0xff] }
 0x7ab   :  { %3523 = vmatpush3.bf16.msra.mxu1 %v3520_v61 }
 0x7ac   :  { %3525 = vmatprep.subr.bf16.mxu1 %v3524_v3 }
 0x7af   :  { %3527 = vmatpush3.bf16.msra.mxu1 %v3524_v3 }
 0x7b0   :  { %3529 = vmatprep.subr.bf16.mxu1 %v3528_v10 }
 0x7b3   :  { %3531 = vmatpush3.bf16.msra.mxu1 %v3528_v10  ;;  %v2610_v10 = vld [vmem:[%s4821_s20 + $0x80] sm:$0xff] }
 0x7b4   :  { %3533 = vmatprep.subr.bf16.mxu1 %v3532_v12  ;;  %v3576_v47 = vpack.c.bf16 %v2611_v6, %v2610_v10  ;;  %v2635_v6 = vld [vmem:[%s4825_s24 + $0xb0] sm:$0xff] }
 0x7b7   :  { %3535 = vmatpush3.bf16.msra.mxu1 %v3532_v12  ;;  %v3579_v12 = vpack.c.bf16 %v2613_v11, %v2612_v43  ;;  %v2637_v11 = vld [vmem:[%s4825_s24 + $0xc0] sm:$0xff] }
 0x871   :  { %v3135_v13 = vpop.f32.mrb[16].mxu1 }
 0x872   :  { %v1378_v14 = vadd.f32 %v3135_v13, %v1325_v30  ;;  %v1369_v15 = vpop.f32.mrb[17].mxu1  ;;  %v2584_v30 = vld [vmem:[%s4817_s16 + $0x80] sm:$0xff]  ;;  %v2615_v13 = vld [vmem:[%s4821_s20 + $0xa8] sm:$0xff] }
 0x873   :  { %v1370_v16 = vadd.f32 %v1369_v15, %v4337_v23  ;;  %v3136_v17 = vpop.f32.mrb[18].mxu1  ;;  %v2579_v23 = vld [vmem:[%s4862_s5 + $0xf0] sm:$0xff]  ;;  %v3540_v37 = vpack.c.bf16 %v2585_v36, %v2584_v30  ;;  %v2617_v15 = vld [vmem:[%s4821_s20 + $0xb8] sm:$0xff] }
 0x874   :  { %v1381_v18 = vadd.f32 %v3136_v17, %v4341_v28  ;;  %v1372_v19 = vpop.f32.mrb[19].mxu1  ;;  %v1386_v21 = vmax.f32 %v1378_v14, 0.0  ;;  %v2618_v17 = vld [vmem:[%s4821_s20 + $0xc0] sm:$0xff]  ;;  %v2625_v30 = vld [vmem:[%s4821_s20 + $0xf8] sm:$0xff] }
 0x875   :  { %v1373_v20 = vadd.f32 %v4335_v22, %v1372_v19  ;;  %v1384_v31 = vmax.f32 %v1370_v16, 0.0  ;;  %v2580_v22 = vld [vmem:[%s4862_s5 + $0xf8] sm:$0xff] }
 0x876   :  { %v1387_v26 = vmax.f32 %v1381_v18, 0.0  ;;  %v3536_v28 = vpack.c.bf16 %v2580_v22, %v2579_v23  ;;  %v2619_v18 = vld [vmem:[%s4821_s20 + $0xc8] sm:$0xff] }
 0x877   :  { %v1385_v32 = vmax.f32 %v1373_v20, 0.0  ;;  %v3588_v19 = vpack.c.bf16 %v2619_v18, %v2618_v17  ;;  %v2620_v20 = vld [vmem:[%s4821_s20 + $0xd0] sm:$0xff]  ;;  %v2597_v23 = vld [vmem:[%s4817_s16 + $0xe8] sm:$0xff] }
 0x878   :  { %v1389_v34 = vpack.c.bf16 %v1387_v26, %v1386_v21  ;;  %3537 = vmatprep.subr.bf16.mxu1 %v3536_v28  ;;  %v2621_v21 = vld [vmem:[%s4821_s20 + $0xd8] sm:$0xff]  ;;  %v2643_v18 = vld [vmem:[%s4825_s24 + $0xf0] sm:$0xff] }
 0x879   :  { %v1388_v35 = vpack.c.bf16 %v1385_v32, %v1384_v31  ;;  %3539 = vmatpush3.bf16.msra.mxu1 %v3536_v28  ;;  %v3591_v26 = vpack.c.bf16 %v2621_v21, %v2620_v20  ;;  %v2622_v31 = vld [vmem:[%s4821_s20 + $0xe0] sm:$0xff]  ;;  %v2623_v32 = vld [vmem:[%s4821_s20 + $0xe8] sm:$0xff]  ;;  %v2624_v28 = vld [vmem:[%s4821_s20 + $0xf0] sm:$0xff] }
 0x87a   :  { %3572 = vmatprep.subr.bf16.mxu1 %v3741_v44  ;;  %v3597_v36 = vpack.c.bf16 %v2625_v30, %v2624_v28  ;;  %v2656_v21 = vld [vmem:[%s4861_s11 + $0x10] sm:$0xff] }
 0x87b   :  { %3138 = vmatpush3.bf16.msra.mxu0 %v1388_v35  ;;  %v2596_v35 = vld [vmem:[%s4817_s16 + $0xe0] sm:$0xff] }
 0x87c   :  { %3139 = vmatprep.subr.bf16.mxu0 %v3739_v24  ;;  %v3564_v22 = vpack.c.bf16 %v2597_v23, %v2596_v35  ;;  %v2650_v35 = vld [vmem:[%s4824_s23 + $0x1] ss:$0 sm:$0xff] }
 0x87f   :  { %3140 = vmatpush3.bf16.msra.mxu0 %v1389_v34  ;;  %v3594_v34 = vpack.c.bf16 %v2623_v32, %v2622_v31 }
 0x880   :  { %3541 = vmatprep.subr.bf16.mxu0 %v3540_v37 }
 0x882   :  { %3142 = vmatmul.mubr.msk.bf16.vlgmr.msra.gmra.mrb[16].mxu0 %vm590_vm9, %v4102_v62 }
 0x883   :  { %3543 = vmatpush3.bf16.msra.mxu0 %v3540_v37  ;;  %v2598_v37 = vld [vmem:[%s4817_s16 + $0xf0] sm:$0xff] }
 0x884   :  { %3545 = vmatprep.subr.bf16.mxu0 %v3544_v9  ;;  %v3568_v39 = vpack.c.bf16 %v2599_v38, %v2598_v37  ;;  %v2651_v37 = vld [vmem:[%s4826_s25 + $0x1] ss:$0 sm:$0xff] }
 0x887   :  { %3547 = vmatpush3.bf16.msra.mxu0 %v3544_v9  ;;  %v2603_v9 = vld [vmem:[%s4814_s13 + $0x1] ss:$0 sm:$0xff] }
 0x888   :  { %3549 = vmatprep.subr.bf16.mxu0 %v3548_v42 }
 0x88b   :  { %3551 = vmatpush3.bf16.msra.mxu0 %v3548_v42 }
 0x88c   :  { %3553 = vmatprep.subr.bf16.mxu0 %v3552_v51 }
 0x88f   :  { %3555 = vmatpush3.bf16.msra.mxu0 %v3552_v51 }
 0x890   :  { %3557 = vmatprep.subr.bf16.mxu0 %v3556_v54 }
 0x893   :  { %3559 = vmatpush3.bf16.msra.mxu0 %v3556_v54 }
 0x894   :  { %3561 = vmatprep.subr.bf16.mxu0 %v3560_v25 }
 0x897   :  { %3563 = vmatpush3.bf16.msra.mxu0 %v3560_v25 }
 0x898   :  { %3565 = vmatprep.subr.bf16.mxu0 %v3564_v22 }
 0x89b   :  { %3567 = vmatpush3.bf16.msra.mxu0 %v3564_v22 }
 0x89c   :  { %3569 = vmatprep.subr.bf16.mxu0 %v3568_v39 }
 0x89f   :  { %3571 = vmatpush3.bf16.msra.mxu0 %v3568_v39 }
 0x8a0   :  { %3599 = vmatprep.subr.bf16.mxu0 %v3741_v44 }
 0x955   :  { %v1424_v5 = vpop.f32.mrb[16].mxu0 }
 0x956   :  { %v1435_v61 = vadd.f32 %v1433_v59, %v1424_v5  ;;  %v3143_v63 = vpop.f32.mrb[17].mxu0  ;;  %v2630_v59 = vld [vmem:[%s4825_s24 + $0x88] sm:$0xff] }
 0x957   :  { %v1427_v3 = vpop.f32.mrb[18].mxu0  ;;  %v3600_v63 = vpack.c.bf16 %v2630_v59, %v2629_v58 }
 0x958   :  { %v1436_v40 = vadd.f32 %v1434_v0, %v1427_v3  ;;  %v3144_v4 = vpop.f32.mrb[19].mxu0  ;;  %3177 = vmatprep.mubr.f32.mxu1 %v1435_v61  ;;  %v2632_v3 = vld [vmem:[%s4825_s24 + $0x98] sm:$0xff] }
 0x959   :  { %v2634_v4 = vld [vmem:[%s4825_s24 + $0xa8] sm:$0xff] }
 0x95a   :  { %3178 = vmatmul.mubr.f32.vlgmr.msra.gmra.mrb[20].mxu1 %v1436_v40 }
 0x95b   :  { %3574 = vmatpush3.bf16.msra.mxu1 %v4364_v48  ;;  %3219 = vmatprep.mubr.msk.f32.mxu1 %vm3740_vm6, %v3739_v24  ;;  %v2614_v48 = vld [vmem:[%s4821_s20 + $0xa0] sm:$0xff] }
 0x95c   :  { %3575 = vmatprep.subr.bf16.mxu1 %v3741_v44  ;;  %v3582_v14 = vpack.c.bf16 %v2615_v13, %v2614_v48  ;;  %v2639_v13 = vld [vmem:[%s4825_s24 + $0xd0] sm:$0xff] }
 0x95e   :  { %3220 = vmatmul.mubr.msk.f32.vlgmr.msra.gmra.mrb[22].mxu1 %vm348_vm5, %v4189_v2  ;;  %v2616_v2 = vld [vmem:[%s4821_s20 + $0xb0] sm:$0xff] }
 0x95f   :  { %3577 = vmatpush3.bf16.msra.mxu1 %v3576_v47  ;;  %3254 = vmatprep.mubr.msk.f32.mxu1 %vm3740_vm6, %v3739_v24  ;;  %v3585_v16 = vpack.c.bf16 %v2617_v15, %v2616_v2  ;;  %v2636_v47 = vld [vmem:[%s4825_s24 + $0xb8] sm:$0xff]  ;;  %v2641_v15 = vld [vmem:[%s4825_s24 + $0xe0] sm:$0xff] }
 0x960   :  { %3578 = vmatprep.subr.bf16.mxu1 %v3741_v44  ;;  %v3609_v43 = vpack.c.bf16 %v2636_v47, %v2635_v6  ;;  %v2670_v47 = vld [vmem:[%s4862_s5 + $0x128] sm:$0xff] }
 0x963   :  { %3580 = vmatpush3.bf16.msra.mxu1 %v3579_v12  ;;  %v2638_v12 = vld [vmem:[%s4825_s24 + $0xc8] sm:$0xff] }
 0x964   :  { %3581 = vmatprep.subr.bf16.mxu1 %v3741_v44  ;;  %v3612_v48 = vpack.c.bf16 %v2638_v12, %v2637_v11  ;;  %v2671_v11 = vld [vmem:[%s4862_s5 + $0x130] sm:$0xff]  ;;  %v2672_v12 = vld [vmem:[%s4862_s5 + $0x138] sm:$0xff] }
 0x967   :  { %3583 = vmatpush3.bf16.msra.mxu1 %v3582_v14  ;;  %v2640_v14 = vld [vmem:[%s4825_s24 + $0xd8] sm:$0xff] }
 0x968   :  { %3584 = vmatprep.subr.bf16.mxu1 %v3741_v44  ;;  %v3615_v2 = vpack.c.bf16 %v2640_v14, %v2639_v13  ;;  %v2673_v13 = vld [vmem:[%s4862_s5 + $0x140] sm:$0xff]  ;;  %v2674_v14 = vld [vmem:[%s4862_s5 + $0x148] sm:$0xff] }
 0x96b   :  { %3586 = vmatpush3.bf16.msra.mxu1 %v3585_v16  ;;  %v2642_v16 = vld [vmem:[%s4825_s24 + $0xe8] sm:$0xff] }
 0x96c   :  { %3587 = vmatprep.subr.bf16.mxu1 %v3741_v44  ;;  %v3618_v17 = vpack.c.bf16 %v2642_v16, %v2641_v15  ;;  %v2675_v15 = vld [vmem:[%s4862_s5 + $0x150] sm:$0xff]  ;;  %v2676_v16 = vld [vmem:[%s4862_s5 + $0x158] sm:$0xff] }
 0x96f   :  { %3589 = vmatpush3.bf16.msra.mxu1 %v3588_v19  ;;  %v2644_v19 = vld [vmem:[%s4825_s24 + $0xf8] sm:$0xff] }
 0x970   :  { %3590 = vmatprep.subr.bf16.mxu1 %v3741_v44  ;;  %v3621_v20 = vpack.c.bf16 %v2644_v19, %v2643_v18  ;;  %v2677_v18 = vld [vmem:[%s4862_s5 + $0x160] sm:$0xff]  ;;  %v2678_v19 = vld [vmem:[%s4862_s5 + $0x168] sm:$0xff] }
 0x973   :  { %3592 = vmatpush3.bf16.msra.mxu1 %v3591_v26  ;;  %v2648_v26 = vld [vmem:[%s4822_s21 + $0x1] ss:$0 sm:$0xff] }
 0x974   :  { %3593 = vmatprep.subr.bf16.mxu1 %v3741_v44 }
 0x977   :  { %3595 = vmatpush3.bf16.msra.mxu1 %v3594_v34 }
 0x978   :  { %3596 = vmatprep.subr.bf16.mxu1 %v3741_v44 }
 0x97b   :  { %3598 = vmatpush3.bf16.msra.mxu1 %v3597_v36 }
 0xa2d   :  { %v3179_v8 = vpop.f32.mrb[20].mxu1 }
 0xa2e   :  { %v1561_v42 = vadd.f32 %v3179_v8, %v2603_v9  ;;  %v1555_v46 = vpop.f32.mrb[21].mxu1 }
 0xa2f   :  { %v1556_v51 = vadd.f32 %v2603_v9, %v1555_v46 }
 0xa30   :  { %v1571_v52 = vmul.f32 %v2604_v41, %v1561_v42 }
 0xa31   :  { %v1570_v53 = vmul.f32 %v2604_v41, %v1556_v51  ;;  %v1747_v54 = vpop.f32.mrb[22].mxu1  ;;  %v2606_v51 = vld [vmem:[%s4818_s17 + $0x1] ss:$0 sm:$0xff] }
 0xa32   :  { %v1579_v56 = vadd.f32 %v2605_v49, %v1571_v52  ;;  %v1748_v57 = vadd.f32 %v1747_v54, %v4339_v27  ;;  %v3221_v25 = vpop.f32.mrb[23].mxu1  ;;  %v2631_v27 = vld [vmem:[%s4825_s24 + $0x90] sm:$0xff] }
 0xa33   :  { %v1578_v5 = vadd.f32 %v2605_v49, %v1570_v53  ;;  %v3603_v40 = vpack.c.bf16 %v2632_v3, %v2631_v27  ;;  %v2607_v53 = vld [vmem:[%s4819_s18 + $0x1] ss:$0 sm:$0xff] }
 0xa34   :  { %3255 = vmatmul.mubr.f32.vlgmr.msra.gmra.mrb[24].mxu1 %v1748_v57  ;;  %v1581_v0 = vmax.f32 %v1579_v56, 0.0  ;;  %v2608_v25 = vld [vmem:[%s4820_s19 + $0x1] ss:$0 sm:$0xff] }
 0xa35   :  { %3294 = vmatprep.mubr.msk.f32.mxu1 %vm266_vm0, %v3969_v29  ;;  %v1580_v61 = vmax.f32 %v1578_v5, 0.0  ;;  %v2633_v29 = vld [vmem:[%s4825_s24 + $0xa0] sm:$0xff] }
 0xa36   :  { %v3606_v10 = vpack.c.bf16 %v2634_v4, %v2633_v29  ;;  %v2665_v3 = vld [vmem:[%s4862_s5 + $0x100] sm:$0xff]  ;;  %v2667_v29 = vld [vmem:[%s4862_s5 + $0x110] sm:$0xff] }
 0xa37   :  { %3212 = vmatprep.mubr.f32.mxu0 %v1580_v61 }
 0xa38   :  { %3213 = vmatmul.mubr.f32.vlgmr.msra.gmra.mrb[14].mxu0 %v1581_v0 }
 0xa39   :  { %3601 = vmatpush3.bf16.msra.mxu0 %v3600_v63  ;;  %3289 = vmatprep.mubr.msk.f32.mxu0 %vm3740_vm6, %v3739_v24 }
 0xa3a   :  { %3602 = vmatprep.subr.bf16.mxu0 %v3741_v44 }
 0xa3d   :  { %3604 = vmatpush3.bf16.msra.mxu0 %v3603_v40  ;;  %v2666_v40 = vld [vmem:[%s4862_s5 + $0x108] sm:$0xff] }
 0xa3e   :  { %3605 = vmatprep.subr.bf16.mxu0 %v3741_v44  ;;  %v3623_v4 = vpack.c.bf16 %v2666_v40, %v2665_v3 }
 0xa41   :  { %3607 = vmatpush3.bf16.msra.mxu0 %v3606_v10  ;;  %v2668_v10 = vld [vmem:[%s4862_s5 + $0x118] sm:$0xff] }
 0xa42   :  { %3608 = vmatprep.subr.bf16.mxu0 %v3741_v44  ;;  %v3627_v6 = vpack.c.bf16 %v2668_v10, %v2667_v29  ;;  %v2697_v10 = vld [vmem:[%s4817_s16 + $0x168] sm:$0xff] }
 0xa45   :  { %3610 = vmatpush3.bf16.msra.mxu0 %v3609_v43 }
 0xa46   :  { %3611 = vmatprep.subr.bf16.mxu0 %v3741_v44 }
 0xa49   :  { %3613 = vmatpush3.bf16.msra.mxu0 %v3612_v48  ;;  %v3635_v48 = vpack.c.bf16 %v2672_v12, %v2671_v11 }
 0xa4a   :  { %3614 = vmatprep.subr.bf16.mxu0 %v3741_v44 }
 0xa4d   :  { %3616 = vmatpush3.bf16.msra.mxu0 %v3615_v2  ;;  %v3639_v2 = vpack.c.bf16 %v2674_v14, %v2673_v13  ;;  %v2705_v13 = vld [vmem:[%s4816_s15 + $0x2] ss:$0 sm:$0xff] }
 0xa4e   :  { %3617 = vmatprep.subr.bf16.mxu0 %v3741_v44 }
 0xa51   :  { %3619 = vmatpush3.bf16.msra.mxu0 %v3618_v17  ;;  %v3643_v17 = vpack.c.bf16 %v2676_v16, %v2675_v15 }
 0xa52   :  { %3620 = vmatprep.subr.bf16.mxu0 %v3741_v44  ;;  %v2649_v44 = vld [vmem:[%s4823_s22 + $0x1] ss:$0 sm:$0xff]  ;;  %s2664_s22 = sld [smem:[#allocation2 + $0x2]] }
 0xa55   :  { %3622 = vmatpush3.bf16.msra.mxu0 %v3621_v20  ;;  %v3647_v20 = vpack.c.bf16 %v2678_v19, %v2677_v18 }
 0xa56   :  { %3297 = vmatprep.subr.mxu0 %v2656_v21 }
 0xb07   :  { %v1869_v31 = vpop.f32.mrb[24].mxu1 }
 0xb08   :  { %v1870_v32 = vadd.f32 %v2648_v26, %v1869_v31  ;;  %v3256_v34 = vpop.f32.mrb[25].mxu1 }
 0xb0a   :  { %v1879_v23 = vmul.f32 %v2649_v44, %v1870_v32 }
 0xb0b   :  { %v3214_v22 = vpop.f32.mrb[14].mxu0 }
 0xb0c   :  { %v1886_v28 = vadd.f32 %v2650_v35, %v1879_v23  ;;  %v1654_v30 = vpop.f32.mrb[15].mxu0  ;;  %v1660_v52 = vadd.f32 %v3214_v22, %v2606_v51 }
 0xb0d   :  { %v1655_v54 = vadd.f32 %v2606_v51, %v1654_v30  ;;  %v2691_v51 = vld [vmem:[%s4817_s16 + $0x138] sm:$0xff] }
 0xb0e   :  { %v1887_v36 = vmax.f32 %v1886_v28, 0.0  ;;  %v1670_v56 = vmul.f32 %v2607_v53, %v1660_v52 }
 0xb0f   :  { %v1669_v57 = vmul.f32 %v2607_v53, %v1655_v54  ;;  %v2692_v53 = vld [vmem:[%s4817_s16 + $0x140] sm:$0xff]  ;;  %v2693_v54 = vld [vmem:[%s4817_s16 + $0x148] sm:$0xff] }
 0xb10   :  { %3290 = vmatmul.mubr.f32.vlgmr.msra.gmra.mrb[20].mxu0 %v1887_v36 }
 0xb11   :  { %3299 = vmatprep.mubr.msk.f32.mxu0 %vm266_vm0, %v4007_v55  ;;  %3298 = vmatpush3.msra.mxu0 %v2656_v21  ;;  %v2652_v55 = vld [vmem:[%s4827_s26 + $0x1] ss:$0 sm:$0xff]  ;;  %v1677_v58 = vadd.f32 %v2608_v25, %v1669_v57  ;;  %v2694_v57 = vld [vmem:[%s4817_s16 + $0x150] sm:$0xff] }
 0xb12   :  { %3311 = vmatprep.subr.bf16.mxu0 %v3739_v24 }
 0xb13   :  { %v1679_v5 = vmax.f32 %v1677_v58, 0.0  ;;  %v2241_v58 = vstv %s2664_s22 }
 0xb14   :  { %3300 = vmatmul.mubr.msk.f32.vlgmr.msra.gmra.mrb[22].mxu0 %vm266_vm0, %v4015_v60 }
 0xb15   :  { %3302 = vmatprep.mubr.msk.f32.mxu0 %vm266_vm0, %v4023_v1  ;;  %v2653_v1 = vld [vmem:[%s4828_s27 + $0x1] ss:$0 sm:$0xff] }
 0xb18   :  { %3303 = vmatmul.mubr.msk.f32.gmra.mrb[24].mxu0 %vm266_vm0, %v4031_v7 }
 0xb19   :  { %3315 = vmatprep.mubr.msk.bf16.mxu0 %vm3740_vm6, %v3739_v24 }
 0xbe3   :  { %v1960_v38 = vpop.f32.mrb[20].mxu0 }
 0xbe4   :  { %v1961_v39 = vadd.f32 %v2651_v37, %v1960_v38  ;;  %v3291_v60 = vpop.f32.mrb[21].mxu0  ;;  %v2679_v38 = vld [vmem:[%s4862_s5 + $0x170] sm:$0xff] }
 0xbe6   :  { %v1970_v9 = vmul.f32 %v2652_v55, %v1961_v39  ;;  %v2680_v39 = vld [vmem:[%s4862_s5 + $0x178] sm:$0xff] }
 0xbe7   :  { %v4640_v7 = vpop.f32.mrb[22].mxu0  ;;  %v3651_v60 = vpack.c.bf16 %v2680_v39, %v2679_v38 }
 0xbe8   :  { %v4642_v41 = vpop.f32.mrb[23].mxu0  ;;  %v1977_v8 = vadd.f32 %v2653_v1, %v1970_v9  ;;  %v2684_v1 = vld [vmem:[%s4817_s16 + $0x100] sm:$0xff] }
 0xbea   :  { %v1978_v42 = vmax.f32 %v1977_v8, 0.0  ;;  %v2688_v8 = vld [vmem:[%s4817_s16 + $0x120] sm:$0xff] }
 0xbeb   :  { %v4644_v46 = vpop.f32.mrb[24].mxu0 }
 0xbec   :  { %3292 = vmatprep.subr.mxu1 %v1978_v42  ;;  %v2134_v49 = vpop.f32.mrb[25].mxu0 }
 0xbed   :  { %3293 = vmatpush3.msra.mxu1 %v1978_v42  ;;  %v2689_v42 = vld [vmem:[%s4817_s16 + $0x128] sm:$0xff] }
 0xbee   :  { %3295 = vmatmul.mubr.msk.f32.vlgmr.msra.gmra.mrb[26].mxu1 %vm266_vm0, %v3978_v33  ;;  %v1678_v33 = vadd.f32 %v2608_v25, %v1670_v56  ;;  %v3671_v56 = vpack.c.bf16 %v2693_v54, %v2692_v53  ;;  %v2695_v25 = vld [vmem:[%s4817_s16 + $0x158] sm:$0xff] }
 0xbef   :  { %3307 = vmatprep.mubr.msk.bf16.mxu1 %vm348_vm5, %v3992_v45 }
 0xbf0   :  { %v1680_v59 = vmax.f32 %v1678_v33, 0.0  ;;  %v3675_v33 = vpack.c.bf16 %v2695_v25, %v2694_v57 }
 0xcc1   :  { %v3296_v45 = vpop.f32.mrb[26].mxu1 }
 0xcc2   :  { %v4659_v61 = vadd.f32 %v3296_v45, %v1680_v59  ;;  %v2045_v63 = vpop.f32.mrb[27].mxu1 }
 0xcc3   :  { %v4661_v0 = vadd.f32 %v2045_v63, %v1679_v5 }
 0xcc5   :  { %v2143_v27 = vpack.c.bf16 %v4659_v61, %v4661_v0  ;;  %v2242_v59 = vmul.f32 %v2241_v58, %v4661_v0  ;;  %v2699_v0 = vld [vmem:[%s4817_s16 + $0x178] sm:$0xff] }
 0xcc7   :  { %3305 = vmatprep.subr.bf16.mxu1 %v2143_v27 }
 0xcc8   :  { %3306 = vmatpush3.bf16.msra.mxu1 %v2143_v27  ;;  %v2243_v27 = vmul.f32 %v2241_v58, %v4659_v61  ;;  %v2698_v61 = vld [vmem:[%s4817_s16 + $0x170] sm:$0xff] }
 0xcc9   :  { %3624 = vmatprep.subr.bf16.mxu1 %v3623_v4 }
 0xccb   :  { %3308 = vmatmul.mubr.msk.bf16.vlgmr.msra.gmra.mrb[28].mxu1 %vm348_vm5, %v4001_v50  ;;  %v2669_v50 = vld [vmem:[%s4862_s5 + $0x120] sm:$0xff] }
 0xccc   :  { %3626 = vmatpush3.bf16.msra.mxu1 %v3623_v4  ;;  %v3631_v43 = vpack.c.bf16 %v2670_v47, %v2669_v50  ;;  %v2696_v4 = vld [vmem:[%s4817_s16 + $0x160] sm:$0xff]  ;;  %v3683_v50 = vpack.c.bf16 %v2699_v0, %v2698_v61 }
 0xccd   :  { %3628 = vmatprep.subr.bf16.mxu1 %v3627_v6  ;;  %v2703_v47 = vld [vmem:[%s4814_s13 + $0x2] ss:$0 sm:$0xff] }
 0xcd0   :  { %3630 = vmatpush3.bf16.msra.mxu1 %v3627_v6  ;;  %v3679_v6 = vpack.c.bf16 %v2697_v10, %v2696_v4 }
 0xcd1   :  { %3632 = vmatprep.subr.bf16.mxu1 %v3631_v43 }
 0xcd4   :  { %3634 = vmatpush3.bf16.msra.mxu1 %v3631_v43  ;;  %v2704_v43 = vld [vmem:[%s4815_s14 + $0x2] ss:$0 sm:$0xff] }
 0xcd5   :  { %3636 = vmatprep.subr.bf16.mxu1 %v3635_v48 }
 0xcd8   :  { %3638 = vmatpush3.bf16.msra.mxu1 %v3635_v48 }
 0xcd9   :  { %3640 = vmatprep.subr.bf16.mxu1 %v3639_v2 }
 0xcdc   :  { %3642 = vmatpush3.bf16.msra.mxu1 %v3639_v2 }
 0xcdd   :  { %3644 = vmatprep.subr.bf16.mxu1 %v3643_v17 }
 0xce0   :  { %3646 = vmatpush3.bf16.msra.mxu1 %v3643_v17 }
 0xce1   :  { %3648 = vmatprep.subr.bf16.mxu1 %v3647_v20 }
 0xce4   :  { %3650 = vmatpush3.bf16.msra.mxu1 %v3647_v20  ;;  %v2706_v20 = vld [vmem:[%s4818_s17 + $0x2] ss:$0 sm:$0xff]  ;;  %s3711_s17 = scalar_lea.vmem %s2496_s7, 256 }
 0xce5   :  { %3652 = vmatprep.subr.bf16.mxu1 %v3651_v60  ;;  %p3712_p5 = scmp.ne.s32.totalorder %s2496_s7, %s3711_s17  ;;  %p3717_p7 = scmp.lt.s32.totalorder %s3711_s17, %s3711_s17 }
 0xce7   :  { %p3718_p8 = por %p3717_p7, %p3716_p6 }
 0xce8   :  { %3654 = vmatpush3.bf16.msra.mxu1 %v3651_v60 }
 0xce9   :  { %p3719_p9 = pnand %p3718_p8, %p3712_p5 }
 0xd9e   :  { %v3309_v21 = vpop.f32.mrb[28].mxu1 }
 0xd9f   :  { %v2187_v26 = vadd.f32 %v3309_v21, %v2134_v49  ;;  %v2178_v44 = vpop.f32.mrb[29].mxu1  ;;  %v2690_v49 = vld [vmem:[%s4817_s16 + $0x130] sm:$0xff]  ;;  %v2707_v21 = vld [vmem:[%s4819_s18 + $0x2] ss:$0 sm:$0xff] }
 0xda0   :  { %v2179_v31 = vadd.f32 %v2178_v44, %v4642_v41  ;;  %v3310_v32 = vpop.f32.mrb[30].mxu1  ;;  %v3667_v52 = vpack.c.bf16 %v2691_v51, %v2690_v49 }
 0xda1   :  { %v2190_v34 = vadd.f32 %v3310_v32, %v4644_v46  ;;  %v2181_v35 = vpop.f32.mrb[31].mxu1  ;;  %v2195_v22 = vmax.f32 %v2187_v26, 0.0  ;;  %v3663_v46 = vpack.c.bf16 %v2689_v42, %v2688_v8  ;;  %v2708_v32 = vld [vmem:[%s4820_s19 + $0x2] ss:$0 sm:$0xff] }
 0xda2   :  { %v2182_v23 = vadd.f32 %v4640_v7, %v2181_v35  ;;  %v2193_v30 = vmax.f32 %v2179_v31, 0.0  ;;  %v2687_v7 = vld [vmem:[%s4817_s16 + $0x118] sm:$0xff] }
 0xda3   :  { %v2196_v28 = vmax.f32 %v2190_v34, 0.0 }
 0xda4   :  { %v2194_v36 = vmax.f32 %v2182_v23, 0.0 }
 0xda5   :  { %v2198_v37 = vpack.c.bf16 %v2196_v28, %v2195_v22 }
 0xda6   :  { %v2197_v55 = vpack.c.bf16 %v2194_v36, %v2193_v30 }
 0xda8   :  { %3312 = vmatpush3.bf16.msra.mxu0 %v2197_v55 }
 0xda9   :  { %3313 = vmatprep.subr.bf16.mxu0 %v3739_v24  ;;  %v2685_v24 = vld [vmem:[%s4817_s16 + $0x108] sm:$0xff] }
 0xdaa   :  { %v3655_v9 = vpack.c.bf16 %v2685_v24, %v2684_v1 }
 0xdac   :  { %3314 = vmatpush3.bf16.msra.mxu0 %v2198_v37 }
 0xdad   :  { %3656 = vmatprep.subr.bf16.mxu0 %v3655_v9 }
 0xdaf   :  { %3316 = vmatmul.mubr.msk.bf16.vlgmr.msra.gmra.mrb[28].mxu0 %vm590_vm9, %v4102_v62  ;;  %v2686_v62 = vld [vmem:[%s4817_s16 + $0x110] sm:$0xff] }
 0xdb0   :  { %v3659_v41 = vpack.c.bf16 %v2687_v7, %v2686_v62  ;;  %3658 = vmatpush3.bf16.msra.mxu0 %v3655_v9 }
 0xdb2   :  { %3660 = vmatprep.subr.bf16.mxu0 %v3659_v41 }
 0xdb4   :  { %3662 = vmatpush3.bf16.msra.mxu0 %v3659_v41 }
 0xdb5   :  { %3664 = vmatprep.subr.bf16.mxu0 %v3663_v46 }
 0xdb8   :  { %3666 = vmatpush3.bf16.msra.mxu0 %v3663_v46 }
 0xdb9   :  { %3668 = vmatprep.subr.bf16.mxu0 %v3667_v52 }
 0xdbc   :  { %3670 = vmatpush3.bf16.msra.mxu0 %v3667_v52 }
 0xdbd   :  { %3672 = vmatprep.subr.bf16.mxu0 %v3671_v56 }
 0xdc0   :  { %3674 = vmatpush3.bf16.msra.mxu0 %v3671_v56 }
 0xdc1   :  { %3676 = vmatprep.subr.bf16.mxu0 %v3675_v33 }
 0xdc4   :  { %3678 = vmatpush3.bf16.msra.mxu0 %v3675_v33 }
 0xdc5   :  { %3680 = vmatprep.subr.bf16.mxu0 %v3679_v6 }
 0xdc8   :  { %3682 = vmatpush3.bf16.msra.mxu0 %v3679_v6 }
 0xdc9   :  { %3684 = vmatprep.subr.bf16.mxu0 %v3683_v50 }
 0xdcc   :  { %3686 = vmatpush3.bf16.msra.mxu0 %v3683_v50 }
 0xe82   :  { %v2233_v45 = vpop.f32.mrb[28].mxu0 }
 0xe83   :  { %v2244_v5 = vadd.f32 %v2242_v59, %v2233_v45  ;;  %v3317_v63 = vpop.f32.mrb[29].mxu0 }
 0xe84   :  { %v2236_v3 = vpop.f32.mrb[30].mxu0 }
 0xe85   :  { %v2245_v40 = vadd.f32 %v2243_v27, %v2236_v3  ;;  %v3318_v29 = vpop.f32.mrb[31].mxu0  ;;  %3351 = vmatprep.mubr.f32.mxu1 %v2244_v5 }
 0xe87   :  { %3352 = vmatmul.mubr.f32.vlgmr.msra.gmra.mrb[32].mxu1 %v2245_v40 }
 0xf5a   :  { %v3353_v11 = vpop.f32.mrb[32].mxu1 }
 0xf5b   :  { %v2370_v12 = vadd.f32 %v3353_v11, %v2703_v47  ;;  %v2364_v48 = vpop.f32.mrb[33].mxu1 }
 0xf5c   :  { %v2365_v14 = vadd.f32 %v2703_v47, %v2364_v48 }
 0xf5d   :  { %v2380_v2 = vmul.f32 %v2704_v43, %v2370_v12 }
 0xf5e   :  { %v2379_v15 = vmul.f32 %v2704_v43, %v2365_v14 }
 0xf5f   :  { %v2388_v16 = vadd.f32 %v2705_v13, %v2380_v2 }
 0xf60   :  { %v2387_v17 = vadd.f32 %v2705_v13, %v2379_v15 }
 0xf61   :  { %v2390_v19 = vmax.f32 %v2388_v16, 0.0 }
 0xf62   :  { %v2389_v18 = vmax.f32 %v2387_v17, 0.0 }
 0xf64   :  { %3386 = vmatprep.mubr.f32.mxu0 %v2389_v18 }
 0xf65   :  { %3387 = vmatmul.mubr.f32.vlgmr.msra.gmra.mrb[26].mxu0 %v2390_v19 }
0x1038   :  { %v3388_v26 = vpop.f32.mrb[26].mxu0 }
0x1039   :  { %v2469_v44 = vadd.f32 %v3388_v26, %v2706_v20  ;;  %v2463_v31 = vpop.f32.mrb[27].mxu0 }
0x103a   :  { %v2464_v34 = vadd.f32 %v2706_v20, %v2463_v31 }
0x103b   :  { %v2479_v35 = vmul.f32 %v2707_v21, %v2469_v44 }
0x103c   :  { %v2478_v23 = vmul.f32 %v2707_v21, %v2464_v34 }
0x103d   :  { %v2487_v22 = vadd.f32 %v2708_v32, %v2479_v35 }
0x103e   :  { %v2486_v28 = vadd.f32 %v2708_v32, %v2478_v23 }
0x103f   :  { %2489 = vst [vmem:[#allocation5 + $0x8] sm:$0xff] %v2487_v22 }
0x1040   :  { %2488 = vst [vmem:[#allocation5] sm:$0xff] %v2486_v28 }
0x1041   :  { %3722 = shalt.err (!%p3719_p9)
}
0x1042   :  { %s3723_s19 = scalar_lea.hbm %s4829_s28, 256 }
0x1043   :  { %p3724_p10 = scmp.ne.s32.totalorder %s4829_s28, %s3723_s19  ;;  %p3727_p11 = scmp.lt.u32.totalorder %s3723_s19, %s4829_s28 }
0x1045   :  { %p3729_p12 = pnand %p3727_p11, %p3724_p10 }
0x1047   :  { %3732 = shalt.err (!%p3729_p12)
}
0x1048   :  { %s3743_s23 = smov 128   ;;  %s3744_s11 = smov 8  }
0x1049   :  { %2501 = dma.vmem_to_hbm [thread:$0]  %s2496_s7, 256, %s4829_s28, [#allocation3], %s3743_s23, %s3743_s23, %s3744_s11  }
0x104a   :  { %3735 = dma.done.wait [#allocation3], 256  }
0x104b   :  { %3736 = vsyncadd [#allocation3], 4294967040 }
0x104c   :  { %2505 = vsyncpa [#allocation3], 1 }
0x104d   :  { %2506 = vsyncpa [#allocation4], 1 }

</bundles_post_ra>
